<compile_context>
chip_gen: v6e
topology: v6e:2x2x1
jax: 0.10.0
libtpu: 0.0.40
codegen_flags: <defaults>
</compile_context>

<pallas_src>
import math
import functools

import jax
import jax.numpy as jnp
from jax.experimental import pallas as pl
from jax.experimental.pallas import tpu as pltpu

LN_EPS = 1e-12  # espnet LayerNorm eps


def _ln(v, g, b):
    mu = jnp.mean(v, axis=-1, keepdims=True)
    var = jnp.mean(jnp.square(v - mu), axis=-1, keepdims=True)
    return (v - mu) * jax.lax.rsqrt(var + LN_EPS) * g + b


# ---------------------------------------------------------------------------
# Pallas kernels
# ---------------------------------------------------------------------------
def matmul_bias_kernel(a_ref, w_ref, b_ref, o_ref, *, relu):
    acc = jnp.dot(a_ref[...], w_ref[...], preferred_element_type=jnp.float32) + b_ref[...]
    if relu:
        acc = jnp.maximum(acc, 0.0)
    o_ref[...] = acc


def encoder_layers_kernel(x_ref, mbias_ref,
                          ln1_g, ln1_b, wqkv, bqkv, wo, bo,
                          ln2_g, ln2_b, w1, b1, w2, b2,
                          aft_g, aft_b, o_ref, *, n_head):
    """All encoder blocks for one batch element; grid = (batch, layer).

    The output block index is constant along the layer axis, so o_ref stays resident in VMEM and
    carries the activation from layer l to layer l+1 (it is written back to HBM only when the
    batch index changes).  x = x + MHA(LN1(x)); x = x + FFN(LN2(x)); after_norm fused on last layer.
    """
    l = pl.program_id(1)
    n_layers = pl.num_programs(1)

    @pl.when(l == 0)
    def _():
        o_ref[0] = x_ref[0]

    x = o_ref[0]                              # (T, D) f32, resident across layers
    mbias = mbias_ref[0]                      # (1, T) additive key-mask bias (0 / -1e30), f32
    T, D = x.shape
    dh = D // n_head

    # --- multi-head self-attention (pre-norm); 1/sqrt(dh) already folded into wq/bq ---
    xn = _ln(x, ln1_g[0], ln1_b[0]).astype(jnp.bfloat16)
    qkv = jnp.dot(xn, wqkv[0], preferred_element_type=jnp.float32) + bqkv[0]       # (T, 3D) f32
    q, k, v = qkv[:, :D], qkv[:, D:2 * D], qkv[:, 2 * D:]

    qh = jnp.transpose(q.reshape(T, n_head, dh), (1, 0, 2)).astype(jnp.bfloat16)   # (H, T, dh)
    kh = jnp.transpose(k.reshape(T, n_head, dh), (1, 0, 2)).astype(jnp.bfloat16)
    vh = jnp.transpose(v.reshape(T, n_head, dh), (1, 0, 2)).astype(jnp.bfloat16)

    # scores for all heads in one batched contraction: (H, T, T)
    s = jax.lax.dot_general(qh, kh, (((2,), (2,)), ((0,), (0,))),
                            preferred_element_type=jnp.float32)
    s = s + mbias                                    # masked keys -> -1e30 (broadcast over H, q)
    s = s - jnp.max(s, axis=-1, keepdims=True)
    e = jnp.exp(s)
    p = e * pl.reciprocal(jnp.sum(e, axis=-1, keepdims=True), approx=True)
    ctx = jax.lax.dot_general(p.astype(jnp.bfloat16), vh, (((2,), (1,)), ((0,), (0,))),
                              preferred_element_type=jnp.float32)                  # (H, T, dh)
    ctx = jnp.transpose(ctx, (1, 0, 2)).reshape(T, D)
    att = jnp.dot(ctx.astype(jnp.bfloat16), wo[0], preferred_element_type=jnp.float32) + bo[0]
    x = x + att

    # --- position-wise feed-forward (pre-norm) ---
    xn2 = _ln(x, ln2_g[0], ln2_b[0]).astype(jnp.bfloat16)
    h1 = jnp.maximum(jnp.dot(xn2, w1[0], preferred_element_type=jnp.float32) + b1[0], 0.0)
    ff = jnp.dot(h1.astype(jnp.bfloat16), w2[0], preferred_element_type=jnp.float32) + b2[0]
    x = x + ff

    @pl.when(l < n_layers - 1)
    def _():
        o_ref[0] = x

    @pl.when(l == n_layers - 1)                      # fused after_norm on the final layer
    def _():
        o_ref[0] = _ln(x, aft_g[...], aft_b[...])


# ---------------------------------------------------------------------------
# Pallas wrappers
# ---------------------------------------------------------------------------
def pallas_matmul_bias(a, w, b, relu=False, tm=512):
    """(M,K)@(K,N)+b [+ReLU]; M-tiled ('parallel'), MXU operands in bf16, f32 accumulate."""
    M, K = a.shape
    N = w.shape[1]
    tm = M if M <= tm else tm                 # full block when small; 512-row tiles otherwise
    return pl.pallas_call(
        functools.partial(matmul_bias_kernel, relu=relu),
        out_shape=jax.ShapeDtypeStruct((M, N), jnp.float32),
        grid=(pl.cdiv(M, tm),),
        in_specs=[pl.BlockSpec((tm, K), lambda i: (i, 0)),
                  pl.BlockSpec((K, N), lambda i: (0, 0)),
                  pl.BlockSpec((1, N), lambda i: (0, 0))],
        out_specs=pl.BlockSpec((tm, N), lambda i: (i, 0)),
        compiler_params=pltpu.CompilerParams(dimension_semantics=("parallel",)),
    )(a.astype(jnp.bfloat16), w.astype(jnp.bfloat16), b)


def pallas_encoder_layers(x, mbias, lp, n_head):
    """One pallas_call running every encoder block (+ after_norm).  lp holds per-layer params
    stacked along a leading layer axis plus the after-norm params."""
    B, T, D = x.shape
    L = lp['wqkv'].shape[0]
    U = lp['w1'].shape[-1]

    def per_layer(shape):
        return pl.BlockSpec((1,) + shape, lambda b, l: (l,) + (0,) * len(shape))

    def per_batch(shape):
        return pl.BlockSpec((1,) + shape, lambda b, l: (b,) + (0,) * len(shape))

    def shared(shape):
        return pl.BlockSpec(shape, lambda b, l: (0,) * len(shape))

    in_specs = [
        per_batch((T, D)),                               # x
        per_batch((1, T)),                               # additive key-mask bias
        per_layer((1, D)), per_layer((1, D)),            # ln1 gamma/beta
        per_layer((D, 3 * D)), per_layer((1, 3 * D)),    # fused wqkv, bqkv
        per_layer((D, D)), per_layer((1, D)),            # wo, bo
        per_layer((1, D)), per_layer((1, D)),            # ln2 gamma/beta
        per_layer((D, U)), per_layer((1, U)),            # w1, b1
        per_layer((U, D)), per_layer((1, D)),            # w2, b2
        shared((1, D)), shared((1, D)),                  # after_norm gamma/beta
    ]
    return pl.pallas_call(
        functools.partial(encoder_layers_kernel, n_head=n_head),
        out_shape=jax.ShapeDtypeStruct((B, T, D), jnp.float32),
        grid=(B, L),
        in_specs=in_specs,
        out_specs=pl.BlockSpec((1, T, D), lambda b, l: (b, 0, 0)),
        compiler_params=pltpu.CompilerParams(
            dimension_semantics=("parallel", "arbitrary"),
            # NOTE: at real ASR sizes (D=512, U=2048, T~1k) re-budget this (v7x: 64 MiB physical)
            # and add a T-tile grid axis; trivially fits at the test sizes here.
            vmem_limit_bytes=32 * 1024 * 1024),
    )(x, mbias,
      lp['ln1_g'], lp['ln1_b'], lp['wqkv'], lp['bqkv'], lp['wo'], lp['bo'],
      lp['ln2_g'], lp['ln2_b'], lp['w1'], lp['b1'], lp['w2'], lp['b2'],
      lp['after_g'], lp['after_b'])


# ---------------------------------------------------------------------------
# Embed: Conv2dSubsampling (two 3x3 stride-2 convs + ReLU, Linear, abs pos-enc), NHWC end-to-end
# ---------------------------------------------------------------------------
def _im2col_3x3_s2_nhwc(x, Ho, Wo):
    """x: (B,H,W,C) NHWC -> (B*Ho*Wo, 9*C) patches, columns ordered (kh, kw, c)."""
    B = x.shape[0]
    C = x.shape[-1]
    cols = [x[:, kh:kh + 2 * Ho:2, kw:kw + 2 * Wo:2, :]
            for kh in range(3) for kw in range(3)]           # each (B, Ho, Wo, C)
    return jnp.concatenate(cols, axis=-1).reshape(B * Ho * Wo, 9 * C)


def sinusoid_pe(length, d_model, offset=0):
    pos = jnp.arange(offset, offset + length, dtype=jnp.float32)[:, None]
    div = jnp.exp(jnp.arange(0, d_model, 2, dtype=jnp.float32)
                  * (-math.log(10000.0) / d_model))
    pe = jnp.zeros((length, d_model), dtype=jnp.float32)
    pe = pe.at[:, 0::2].set(jnp.sin(pos * div))
    pe = pe.at[:, 1::2].set(jnp.cos(pos * div))
    return pe


def conv2d_subsampling(x, mask, ep):
    """x: (B, T, idim), mask: (B, 1, T) uint8.  Mirrors espnet Conv2dSubsampling, computed
    channels-last with the convolutions lowered to M-tiled Pallas GEMMs (im2col)."""
    B, T, F = x.shape
    C = ep['conv1_w'].shape[1]                               # GEMM weight is (9*Cin, Cout)

    # conv1 (1 -> C, 3x3, stride 2) + ReLU
    Ho1, Wo1 = (T - 3) // 2 + 1, (F - 3) // 2 + 1
    cols = _im2col_3x3_s2_nhwc(x[..., None], Ho1, Wo1)       # Cin = 1
    y = pallas_matmul_bias(cols, ep['conv1_w'], ep['conv1_b'], relu=True)
    y = y.reshape(B, Ho1, Wo1, C)                            # stays NHWC, no transpose

    # conv2 (C -> C, 3x3, stride 2) + ReLU
    Ho2, Wo2 = (Ho1 - 3) // 2 + 1, (Wo1 - 3) // 2 + 1
    cols = _im2col_3x3_s2_nhwc(y, Ho2, Wo2)
    y = pallas_matmul_bias(cols, ep['conv2_w'], ep['conv2_b'], relu=True)
    y = y.reshape(B * Ho2, Wo2 * C)                          # flatten in (f, c) order (NHWC)

    # embed Linear
    y = pallas_matmul_bias(y, ep['lin_w'], ep['lin_b'], relu=False)
    D = y.shape[-1]
    y = y.reshape(B, Ho2, D)

    # absolute PositionalEncoding: x * sqrt(d) + pe  (dropout = identity in eval)
    y = y * math.sqrt(D) + sinusoid_pe(Ho2, D)[None]

    new_mask = mask[:, :, :-2:2][:, :, :-2:2]
    return y, new_mask


# ---------------------------------------------------------------------------
# Parameter init (synthetic, torch-style layouts) and one-time host-side packing
# ---------------------------------------------------------------------------
def init_params(key, idim, D, H, U, num_blocks):
    F1 = (idim - 3) // 2 + 1
    F2 = (F1 - 3) // 2 + 1
    ks = jax.random.split(key, 4 + num_blocks)

    def nrm(k, shape, fan_in):
        return jax.random.normal(k, shape, jnp.float32) / math.sqrt(fan_in)

    embed = dict(
        conv1_w=nrm(ks[0], (D, 1, 3, 3), 9),        # torch layout (Cout, Cin, kh, kw)
        conv1_b=jnp.zeros((D,), jnp.float32),
        conv2_w=nrm(ks[1], (D, D, 3, 3), 9 * D),
        conv2_b=jnp.zeros((D,), jnp.float32),
        # rows ordered (f, c) to match the NHWC flatten; a real torch checkpoint's (c, f)-ordered
        # rows would just be permuted accordingly at load time.
        lin_w=nrm(ks[2], (F2 * D, D), F2 * D),
        lin_b=jnp.zeros((D,), jnp.float32),
    )
    layers = []
    for i in range(num_blocks):
        lk = jax.random.split(ks[4 + i], 6)
        layers.append(dict(
            ln1_g=jnp.ones((D,), jnp.float32), ln1_b=jnp.zeros((D,), jnp.float32),
            wq=nrm(lk[0], (D, D), D), bq=jnp.zeros((D,), jnp.float32),
            wk=nrm(lk[1], (D, D), D), bk=jnp.zeros((D,), jnp.float32),
            wv=nrm(lk[2], (D, D), D), bv=jnp.zeros((D,), jnp.float32),
            wo=nrm(lk[3], (D, D), D), bo=jnp.zeros((D,), jnp.float32),
            ln2_g=jnp.ones((D,), jnp.float32), ln2_b=jnp.zeros((D,), jnp.float32),
            w1=nrm(lk[4], (D, U), D), b1=jnp.zeros((U,), jnp.float32),
            w2=nrm(lk[5], (U, D), U), b2=jnp.zeros((D,), jnp.float32),
        ))
    return dict(embed=embed, layers=layers,
                after_g=jnp.ones((D,), jnp.float32), after_b=jnp.zeros((D,), jnp.float32))


def pack_params(params, n_head):
    """One-time host-side packing: conv weights -> (kh,kw,ci)-ordered GEMM layout (bf16),
    Q/K/V fused with 1/sqrt(dh) folded into wq/bq, per-layer tensors stacked along a leading
    layer axis.  MXU inputs in bf16; LayerNorm params and biases stay f32."""
    ep = params['embed']
    C = ep['conv1_w'].shape[0]
    embed = dict(
        conv1_w=ep['conv1_w'].transpose(2, 3, 1, 0).reshape(9 * 1, C).astype(jnp.bfloat16),
        conv1_b=ep['conv1_b'].reshape(1, C),
        conv2_w=ep['conv2_w'].transpose(2, 3, 1, 0).reshape(9 * C, C).astype(jnp.bfloat16),
        conv2_b=ep['conv2_b'].reshape(1, C),
        lin_w=ep['lin_w'].astype(jnp.bfloat16),
        lin_b=ep['lin_b'].reshape(1, -1),
    )

    D = params['layers'][0]['wq'].shape[0]
    scale = 1.0 / math.sqrt(D // n_head)

    def stack(fn):
        return jnp.stack([fn(l) for l in params['layers']], axis=0)

    layers = dict(
        ln1_g=stack(lambda l: l['ln1_g'].reshape(1, D)),
        ln1_b=stack(lambda l: l['ln1_b'].reshape(1, D)),
        wqkv=stack(lambda l: jnp.concatenate(
            [l['wq'] * scale, l['wk'], l['wv']], axis=1)).astype(jnp.bfloat16),
        bqkv=stack(lambda l: jnp.concatenate(
            [l['bq'] * scale, l['bk'], l['bv']]).reshape(1, 3 * D)),
        wo=stack(lambda l: l['wo']).astype(jnp.bfloat16),
        bo=stack(lambda l: l['bo'].reshape(1, D)),
        ln2_g=stack(lambda l: l['ln2_g'].reshape(1, D)),
        ln2_b=stack(lambda l: l['ln2_b'].reshape(1, D)),
        w1=stack(lambda l: l['w1']).astype(jnp.bfloat16),
        b1=stack(lambda l: l['b1'].reshape(1, -1)),
        w2=stack(lambda l: l['w2']).astype(jnp.bfloat16),
        b2=stack(lambda l: l['b2'].reshape(1, D)),
        after_g=params['after_g'].reshape(1, D),
        after_b=params['after_b'].reshape(1, D),
    )
    return dict(embed=embed, layers=layers)


# ---------------------------------------------------------------------------
# Full forward (Encoder.forward with center_len=0: embed -> N blocks -> after_norm)
# ---------------------------------------------------------------------------
def encoder_forward(xs, masks, packed, n_head):
    x, m = conv2d_subsampling(xs, masks, packed['embed'])
    mbias = (m.astype(jnp.float32) - 1.0) * 1e30       # additive key mask: 0 (data) / -1e30 (pad)
    x = pallas_encoder_layers(x, mbias, packed['layers'], n_head)
    return x, m


if __name__ == "__main__":
    # Small config consistent with the module: idim=16, attention_dim=32, heads=4,
    # linear_units=64, num_blocks=2, center_len=0 (no chunking), seq len 34 -> 7 after subsampling.
    B, T, IDIM = 2, 34, 16
    D, H, U, NBLOCKS = 32, 4, 64, 2

    key = jax.random.PRNGKey(0)
    kx, kp = jax.random.split(key)
    xs = jax.random.normal(kx, (B, T, IDIM), jnp.float32)
    masks = jnp.ones((B, 1, T), jnp.uint8)              # forward() default: all-ones byte mask

    params = init_params(kp, IDIM, D, H, U, NBLOCKS)
    packed = pack_params(params, H)

    fwd = jax.jit(functools.partial(encoder_forward, n_head=H))
    out, out_mask = fwd(xs, masks, packed)
    out = jax.block_until_ready(out)
    out_mask = jax.block_until_ready(out_mask)

    assert out.shape == (B, 7, D), out.shape
    assert out_mask.shape == (B, 1, 7), out_mask.shape
    assert bool(jnp.all(jnp.isfinite(out)))
    print("KERNEL_OK")
</pallas_src>

<mosaic_0001>
module attributes {stable_mosaic.version = 11 : i64} {
  func.func @matmul_bias_kernel(%arg0: i32, %arg1: memref<224x9xbf16, #tpu.memory_space<vmem>>, %arg2: memref<9x32xbf16, #tpu.memory_space<vmem>>, %arg3: memref<1x32xf32, #tpu.memory_space<vmem>>, %arg4: memref<224x32xf32, #tpu.memory_space<vmem>>) attributes {dimension_semantics = [#tpu.dimension_semantics<parallel>], iteration_bounds = array<i64: 1>, scalar_prefetch = 0 : i64, scratch_operands = 0 : i64, tpu.core_type = #tpu.core_type<tc>, window_params = [{transform_indices = @transform_0, window_bounds = array<i64: 224, 9>}, {pipeline_mode = #tpu.pipeline_mode<synchronous>, transform_indices = @transform_1, window_bounds = array<i64: 9, 32>}, {pipeline_mode = #tpu.pipeline_mode<synchronous>, transform_indices = @transform_2, window_bounds = array<i64: 1, 32>}, {transform_indices = @transform_3, window_bounds = array<i64: 224, 32>}]} {
    %c0 = arith.constant 0 : index
    %c0_0 = arith.constant 0 : index
    %0 = vector.load %arg1[%c0, %c0_0] : memref<224x9xbf16, #tpu.memory_space<vmem>>, vector<224x9xbf16>
    %c0_1 = arith.constant 0 : index
    %c0_2 = arith.constant 0 : index
    %1 = vector.load %arg2[%c0_1, %c0_2] : memref<9x32xbf16, #tpu.memory_space<vmem>>, vector<9x32xbf16>
    %cst = arith.constant dense<0.000000e+00> : vector<224x32xf32>
    %2 = tpu.matmul %0, %1, %cst {dimension_numbers = #tpu.dot_dimension_numbers<[1], [0], [0], [1], [0, 0, 1, 1], [], []>} : vector<224x9xbf16>, vector<9x32xbf16>, vector<224x32xf32> -> vector<224x32xf32>
    %c0_3 = arith.constant 0 : index
    %c0_4 = arith.constant 0 : index
    %3 = vector.load %arg3[%c0_3, %c0_4] : memref<1x32xf32, #tpu.memory_space<vmem>>, vector<1x32xf32>
    %4 = vector.broadcast %3 : vector<1x32xf32> to vector<224x32xf32>
    %5 = arith.addf %2, %4 : vector<224x32xf32>
    %cst_5 = arith.constant 0.000000e+00 : f32
    %6 = vector.broadcast %cst_5 : f32 to vector<224x32xf32>
    %7 = arith.maximumf %5, %6 : vector<224x32xf32>
    %c0_6 = arith.constant 0 : index
    %c0_7 = arith.constant 0 : index
    %8 = vector.load %arg4[%c0_6, %c0_7] : memref<224x32xf32, #tpu.memory_space<vmem>>, vector<224x32xf32>
    tpu.vector_store %arg4[%c0_6, %c0_7], %7 {strides = array<i32>} : memref<224x32xf32, #tpu.memory_space<vmem>>, vector<224x32xf32>,
    return
  }
  func.func @transform_0(%arg0: i32) -> (i32, i32) {
    %c0_i32 = arith.constant 0 : i32
    %c0_i32_0 = arith.constant 0 : i32
    return %arg0, %c0_i32 : i32, i32
  }
  func.func @transform_1(%arg0: i32) -> (i32, i32) {
    %c0_i32 = arith.constant 0 : i32
    %c0_i32_0 = arith.constant 0 : i32
    %c0_i32_1 = arith.constant 0 : i32
    return %c0_i32, %c0_i32_0 : i32, i32
  }
  func.func @transform_2(%arg0: i32) -> (i32, i32) {
    %c0_i32 = arith.constant 0 : i32
    %c0_i32_0 = arith.constant 0 : i32
    %c0_i32_1 = arith.constant 0 : i32
    return %c0_i32, %c0_i32_0 : i32, i32
  }
  func.func @transform_3(%arg0: i32) -> (i32, i32) {
    %c0_i32 = arith.constant 0 : i32
    %c0_i32_0 = arith.constant 0 : i32
    return %arg0, %c0_i32 : i32, i32
  }
}

module attributes {stable_mosaic.version = 11 : i64} {
  func.func @matmul_bias_kernel(%arg0: i32, %arg1: memref<42x288xbf16, #tpu.memory_space<vmem>>, %arg2: memref<288x32xbf16, #tpu.memory_space<vmem>>, %arg3: memref<1x32xf32, #tpu.memory_space<vmem>>, %arg4: memref<42x32xf32, #tpu.memory_space<vmem>>) attributes {dimension_semantics = [#tpu.dimension_semantics<parallel>], iteration_bounds = array<i64: 1>, scalar_prefetch = 0 : i64, scratch_operands = 0 : i64, tpu.core_type = #tpu.core_type<tc>, window_params = [{transform_indices = @transform_0, window_bounds = array<i64: 42, 288>}, {pipeline_mode = #tpu.pipeline_mode<synchronous>, transform_indices = @transform_1, window_bounds = array<i64: 288, 32>}, {pipeline_mode = #tpu.pipeline_mode<synchronous>, transform_indices = @transform_2, window_bounds = array<i64: 1, 32>}, {transform_indices = @transform_3, window_bounds = array<i64: 42, 32>}]} {
    %c0 = arith.constant 0 : index
    %c0_0 = arith.constant 0 : index
    %0 = vector.load %arg1[%c0, %c0_0] : memref<42x288xbf16, #tpu.memory_space<vmem>>, vector<42x288xbf16>
    %c0_1 = arith.constant 0 : index
    %c0_2 = arith.constant 0 : index
    %1 = vector.load %arg2[%c0_1, %c0_2] : memref<288x32xbf16, #tpu.memory_space<vmem>>, vector<288x32xbf16>
    %cst = arith.constant dense<0.000000e+00> : vector<42x32xf32>
    %2 = tpu.matmul %0, %1, %cst {dimension_numbers = #tpu.dot_dimension_numbers<[1], [0], [0], [1], [0, 0, 1, 1], [], []>} : vector<42x288xbf16>, vector<288x32xbf16>, vector<42x32xf32> -> vector<42x32xf32>
    %c0_3 = arith.constant 0 : index
    %c0_4 = arith.constant 0 : index
    %3 = vector.load %arg3[%c0_3, %c0_4] : memref<1x32xf32, #tpu.memory_space<vmem>>, vector<1x32xf32>
    %4 = vector.broadcast %3 : vector<1x32xf32> to vector<42x32xf32>
    %5 = arith.addf %2, %4 : vector<42x32xf32>
    %cst_5 = arith.constant 0.000000e+00 : f32
    %6 = vector.broadcast %cst_5 : f32 to vector<42x32xf32>
    %7 = arith.maximumf %5, %6 : vector<42x32xf32>
    %c0_6 = arith.constant 0 : index
    %c0_7 = arith.constant 0 : index
    %8 = vector.load %arg4[%c0_6, %c0_7] : memref<42x32xf32, #tpu.memory_space<vmem>>, vector<42x32xf32>
    tpu.vector_store %arg4[%c0_6, %c0_7], %7 {strides = array<i32>} : memref<42x32xf32, #tpu.memory_space<vmem>>, vector<42x32xf32>,
    return
  }
  func.func @transform_0(%arg0: i32) -> (i32, i32) {
    %c0_i32 = arith.constant 0 : i32
    %c0_i32_0 = arith.constant 0 : i32
    return %arg0, %c0_i32 : i32, i32
  }
  func.func @transform_1(%arg0: i32) -> (i32, i32) {
    %c0_i32 = arith.constant 0 : i32
    %c0_i32_0 = arith.constant 0 : i32
    %c0_i32_1 = arith.constant 0 : i32
    return %c0_i32, %c0_i32_0 : i32, i32
  }
  func.func @transform_2(%arg0: i32) -> (i32, i32) {
    %c0_i32 = arith.constant 0 : i32
    %c0_i32_0 = arith.constant 0 : i32
    %c0_i32_1 = arith.constant 0 : i32
    return %c0_i32, %c0_i32_0 : i32, i32
  }
  func.func @transform_3(%arg0: i32) -> (i32, i32) {
    %c0_i32 = arith.constant 0 : i32
    %c0_i32_0 = arith.constant 0 : i32
    return %arg0, %c0_i32 : i32, i32
  }
}

module attributes {stable_mosaic.version = 11 : i64} {
  func.func @matmul_bias_kernel(%arg0: i32, %arg1: memref<14x96xbf16, #tpu.memory_space<vmem>>, %arg2: memref<96x32xbf16, #tpu.memory_space<vmem>>, %arg3: memref<1x32xf32, #tpu.memory_space<vmem>>, %arg4: memref<14x32xf32, #tpu.memory_space<vmem>>) attributes {dimension_semantics = [#tpu.dimension_semantics<parallel>], iteration_bounds = array<i64: 1>, scalar_prefetch = 0 : i64, scratch_operands = 0 : i64, tpu.core_type = #tpu.core_type<tc>, window_params = [{transform_indices = @transform_0, window_bounds = array<i64: 14, 96>}, {pipeline_mode = #tpu.pipeline_mode<synchronous>, transform_indices = @transform_1, window_bounds = array<i64: 96, 32>}, {pipeline_mode = #tpu.pipeline_mode<synchronous>, transform_indices = @transform_2, window_bounds = array<i64: 1, 32>}, {transform_indices = @transform_3, window_bounds = array<i64: 14, 32>}]} {
    %c0 = arith.constant 0 : index
    %c0_0 = arith.constant 0 : index
    %0 = vector.load %arg1[%c0, %c0_0] : memref<14x96xbf16, #tpu.memory_space<vmem>>, vector<14x96xbf16>
    %c0_1 = arith.constant 0 : index
    %c0_2 = arith.constant 0 : index
    %1 = vector.load %arg2[%c0_1, %c0_2] : memref<96x32xbf16, #tpu.memory_space<vmem>>, vector<96x32xbf16>
    %cst = arith.constant dense<0.000000e+00> : vector<14x32xf32>
    %2 = tpu.matmul %0, %1, %cst {dimension_numbers = #tpu.dot_dimension_numbers<[1], [0], [0], [1], [0, 0, 1, 1], [], []>} : vector<14x96xbf16>, vector<96x32xbf16>, vector<14x32xf32> -> vector<14x32xf32>
    %c0_3 = arith.constant 0 : index
    %c0_4 = arith.constant 0 : index
    %3 = vector.load %arg3[%c0_3, %c0_4] : memref<1x32xf32, #tpu.memory_space<vmem>>, vector<1x32xf32>
    %4 = vector.broadcast %3 : vector<1x32xf32> to vector<14x32xf32>
    %5 = arith.addf %2, %4 : vector<14x32xf32>
    %c0_5 = arith.constant 0 : index
    %c0_6 = arith.constant 0 : index
    %6 = vector.load %arg4[%c0_5, %c0_6] : memref<14x32xf32, #tpu.memory_space<vmem>>, vector<14x32xf32>
    tpu.vector_store %arg4[%c0_5, %c0_6], %5 {strides = array<i32>} : memref<14x32xf32, #tpu.memory_space<vmem>>, vector<14x32xf32>,
    return
  }
  func.func @transform_0(%arg0: i32) -> (i32, i32) {
    %c0_i32 = arith.constant 0 : i32
    %c0_i32_0 = arith.constant 0 : i32
    return %arg0, %c0_i32 : i32, i32
  }
  func.func @transform_1(%arg0: i32) -> (i32, i32) {
    %c0_i32 = arith.constant 0 : i32
    %c0_i32_0 = arith.constant 0 : i32
    %c0_i32_1 = arith.constant 0 : i32
    return %c0_i32, %c0_i32_0 : i32, i32
  }
  func.func @transform_2(%arg0: i32) -> (i32, i32) {
    %c0_i32 = arith.constant 0 : i32
    %c0_i32_0 = arith.constant 0 : i32
    %c0_i32_1 = arith.constant 0 : i32
    return %c0_i32, %c0_i32_0 : i32, i32
  }
  func.func @transform_3(%arg0: i32) -> (i32, i32) {
    %c0_i32 = arith.constant 0 : i32
    %c0_i32_0 = arith.constant 0 : i32
    return %arg0, %c0_i32 : i32, i32
  }
}

module attributes {stable_mosaic.version = 11 : i64} {
  func.func @encoder_layers_kernel(%arg0: i32, %arg1: i32, %arg2: memref<1x7x32xf32, #tpu.memory_space<vmem>>, %arg3: memref<1x1x7xf32, #tpu.memory_space<vmem>>, %arg4: memref<1x1x32xf32, #tpu.memory_space<vmem>>, %arg5: memref<1x1x32xf32, #tpu.memory_space<vmem>>, %arg6: memref<1x32x96xbf16, #tpu.memory_space<vmem>>, %arg7: memref<1x1x96xf32, #tpu.memory_space<vmem>>, %arg8: memref<1x32x32xbf16, #tpu.memory_space<vmem>>, %arg9: memref<1x1x32xf32, #tpu.memory_space<vmem>>, %arg10: memref<1x1x32xf32, #tpu.memory_space<vmem>>, %arg11: memref<1x1x32xf32, #tpu.memory_space<vmem>>, %arg12: memref<1x32x64xbf16, #tpu.memory_space<vmem>>, %arg13: memref<1x1x64xf32, #tpu.memory_space<vmem>>, %arg14: memref<1x64x32xbf16, #tpu.memory_space<vmem>>, %arg15: memref<1x1x32xf32, #tpu.memory_space<vmem>>, %arg16: memref<1x32xf32, #tpu.memory_space<vmem>>, %arg17: memref<1x32xf32, #tpu.memory_space<vmem>>, %arg18: memref<1x7x32xf32, #tpu.memory_space<vmem>>) attributes {dimension_semantics = [#tpu.dimension_semantics<parallel>, #tpu.dimension_semantics<arbitrary>], iteration_bounds = array<i64: 2, 2>, scalar_prefetch = 0 : i64, scratch_operands = 0 : i64, tpu.core_type = #tpu.core_type<tc>, window_params = [{transform_indices = @transform_0, window_bounds = array<i64: 1, 7, 32>}, {transform_indices = @transform_1, window_bounds = array<i64: 1, 1, 7>}, {transform_indices = @transform_2, window_bounds = array<i64: 1, 1, 32>}, {transform_indices = @transform_3, window_bounds = array<i64: 1, 1, 32>}, {transform_indices = @transform_4, window_bounds = array<i64: 1, 32, 96>}, {transform_indices = @transform_5, window_bounds = array<i64: 1, 1, 96>}, {transform_indices = @transform_6, window_bounds = array<i64: 1, 32, 32>}, {transform_indices = @transform_7, window_bounds = array<i64: 1, 1, 32>}, {transform_indices = @transform_8, window_bounds = array<i64: 1, 1, 32>}, {transform_indices = @transform_9, window_bounds = array<i64: 1, 1, 32>}, {transform_indices = @transform_10, window_bounds = array<i64: 1, 32, 64>}, {transform_indices = @transform_11, window_bounds = array<i64: 1, 1, 64>}, {transform_indices = @transform_12, window_bounds = array<i64: 1, 64, 32>}, {transform_indices = @transform_13, window_bounds = array<i64: 1, 1, 32>}, {pipeline_mode = #tpu.pipeline_mode<synchronous>, transform_indices = @transform_14, window_bounds = array<i64: 1, 32>}, {pipeline_mode = #tpu.pipeline_mode<synchronous>, transform_indices = @transform_15, window_bounds = array<i64: 1, 32>}, {transform_indices = @transform_16, window_bounds = array<i64: 1, 7, 32>}]} {
    %c0_i32 = arith.constant 0 : i32
    %0 = arith.cmpi eq, %arg1, %c0_i32 : i32
    %1 = arith.extui %0 : i1 to i32
    %c0_i32_0 = arith.constant 0 : i32
    %2 = arith.cmpi ne, %1, %c0_i32_0 : i32
    scf.if %2 {
      %c0_63 = arith.constant 0 : index
      %c0_64 = arith.constant 0 : index
      %c0_65 = arith.constant 0 : index
      %131 = vector.load %arg2[%c0_63, %c0_64, %c0_65] : memref<1x7x32xf32, #tpu.memory_space<vmem>>, vector<1x7x32xf32>
      %132 = vector.shape_cast %131 : vector<1x7x32xf32> to vector<7x32xf32>
      %c0_66 = arith.constant 0 : index
      %c0_67 = arith.constant 0 : index
      %c0_68 = arith.constant 0 : index
      %133 = vector.load %arg18[%c0_66, %c0_67, %c0_68] : memref<1x7x32xf32, #tpu.memory_space<vmem>>, vector<1x7x32xf32>
      %134 = vector.shape_cast %133 : vector<1x7x32xf32> to vector<7x32xf32>
      %135 = vector.shape_cast %132 : vector<7x32xf32> to vector<1x7x32xf32>
      tpu.vector_store %arg18[%c0_66, %c0_67, %c0_68], %135 {strides = array<i32>} : memref<1x7x32xf32, #tpu.memory_space<vmem>>, vector<1x7x32xf32>,
    } else {
    }
    %c0 = arith.constant 0 : index
    %c0_1 = arith.constant 0 : index
    %c0_2 = arith.constant 0 : index
    %3 = vector.load %arg18[%c0, %c0_1, %c0_2] : memref<1x7x32xf32, #tpu.memory_space<vmem>>, vector<1x7x32xf32>
    %4 = vector.shape_cast %3 : vector<1x7x32xf32> to vector<7x32xf32>
    %c0_3 = arith.constant 0 : index
    %c0_4 = arith.constant 0 : index
    %c0_5 = arith.constant 0 : index
    %5 = vector.load %arg3[%c0_3, %c0_4, %c0_5] : memref<1x1x7xf32, #tpu.memory_space<vmem>>, vector<1x1x7xf32>
    %6 = vector.shape_cast %5 : vector<1x1x7xf32> to vector<1x7xf32>
    %c0_6 = arith.constant 0 : index
    %c0_7 = arith.constant 0 : index
    %c0_8 = arith.constant 0 : index
    %7 = vector.load %arg4[%c0_6, %c0_7, %c0_8] : memref<1x1x32xf32, #tpu.memory_space<vmem>>, vector<1x1x32xf32>
    %8 = vector.shape_cast %7 : vector<1x1x32xf32> to vector<1x32xf32>
    %c0_9 = arith.constant 0 : index
    %c0_10 = arith.constant 0 : index
    %c0_11 = arith.constant 0 : index
    %9 = vector.load %arg5[%c0_9, %c0_10, %c0_11] : memref<1x1x32xf32, #tpu.memory_space<vmem>>, vector<1x1x32xf32>
    %10 = vector.shape_cast %9 : vector<1x1x32xf32> to vector<1x32xf32>
    %cst = arith.constant dense<0.000000e+00> : vector<7xf32>
    %11 = vector.multi_reduction <add>, %4, %cst [1] : vector<7x32xf32> to vector<7xf32>
    %12 = vector.shape_cast %11 : vector<7xf32> to vector<7x1xf32>
    %cst_12 = arith.constant 3.200000e+01 : f32
    %13 = vector.broadcast %cst_12 : f32 to vector<7x1xf32>
    %14 = arith.divf %12, %13 : vector<7x1xf32>
    %15 = vector.broadcast %14 : vector<7x1xf32> to vector<7x32xf32>
    %16 = arith.subf %4, %15 : vector<7x32xf32>
    %17 = arith.mulf %16, %16 : vector<7x32xf32>
    %cst_13 = arith.constant dense<0.000000e+00> : vector<7xf32>
    %18 = vector.multi_reduction <add>, %17, %cst_13 [1] : vector<7x32xf32> to vector<7xf32>
    %19 = vector.shape_cast %18 : vector<7xf32> to vector<7x1xf32>
    %cst_14 = arith.constant 3.200000e+01 : f32
    %20 = vector.broadcast %cst_14 : f32 to vector<7x1xf32>
    %21 = arith.divf %19, %20 : vector<7x1xf32>
    %22 = vector.broadcast %14 : vector<7x1xf32> to vector<7x32xf32>
    %23 = arith.subf %4, %22 : vector<7x32xf32>
    %cst_15 = arith.constant 9.99999996E-13 : f32
    %24 = vector.broadcast %cst_15 : f32 to vector<7x1xf32>
    %25 = arith.addf %21, %24 : vector<7x1xf32>
    %26 = math.rsqrt %25 : vector<7x1xf32>
    %27 = vector.broadcast %26 : vector<7x1xf32> to vector<7x32xf32>
    %28 = arith.mulf %23, %27 : vector<7x32xf32>
    %29 = vector.broadcast %8 : vector<1x32xf32> to vector<7x32xf32>
    %30 = arith.mulf %28, %29 : vector<7x32xf32>
    %31 = vector.broadcast %10 : vector<1x32xf32> to vector<7x32xf32>
    %32 = arith.addf %30, %31 : vector<7x32xf32>
    %33 = arith.truncf %32 : vector<7x32xf32> to vector<7x32xbf16>
    %c0_16 = arith.constant 0 : index
    %c0_17 = arith.constant 0 : index
    %c0_18 = arith.constant 0 : index
    %34 = vector.load %arg6[%c0_16, %c0_17, %c0_18] : memref<1x32x96xbf16, #tpu.memory_space<vmem>>, vector<1x32x96xbf16>
    %35 = vector.shape_cast %34 : vector<1x32x96xbf16> to vector<32x96xbf16>
    %cst_19 = arith.constant dense<0.000000e+00> : vector<7x96xf32>
    %36 = tpu.matmul %33, %35, %cst_19 {dimension_numbers = #tpu.dot_dimension_numbers<[1], [0], [0], [1], [0, 0, 1, 1], [], []>} : vector<7x32xbf16>, vector<32x96xbf16>, vector<7x96xf32> -> vector<7x96xf32>
    %c0_20 = arith.constant 0 : index
    %c0_21 = arith.constant 0 : index
    %c0_22 = arith.constant 0 : index
    %37 = vector.load %arg7[%c0_20, %c0_21, %c0_22] : memref<1x1x96xf32, #tpu.memory_space<vmem>>, vector<1x1x96xf32>
    %38 = vector.shape_cast %37 : vector<1x1x96xf32> to vector<1x96xf32>
    %39 = vector.broadcast %38 : vector<1x96xf32> to vector<7x96xf32>
    %40 = arith.addf %36, %39 : vector<7x96xf32>
    %41 = vector.extract_strided_slice %40 {offsets = [0, 0], sizes = [7, 32], strides = [1, 1]} : vector<7x96xf32> to vector<7x32xf32>
    %42 = vector.extract_strided_slice %40 {offsets = [0, 32], sizes = [7, 32], strides = [1, 1]} : vector<7x96xf32> to vector<7x32xf32>
    %43 = vector.extract_strided_slice %40 {offsets = [0, 64], sizes = [7, 32], strides = [1, 1]} : vector<7x96xf32> to vector<7x32xf32>
    %44 = vector.shape_cast %41 : vector<7x32xf32> to vector<7x4x8xf32>
    %45 = tpu.transpose %44, [1, 0, 2] : vector<7x4x8xf32> -> vector<4x7x8xf32>
    %46 = arith.truncf %45 : vector<4x7x8xf32> to vector<4x7x8xbf16>
    %47 = vector.shape_cast %42 : vector<7x32xf32> to vector<7x4x8xf32>
    %48 = tpu.transpose %47, [1, 0, 2] : vector<7x4x8xf32> -> vector<4x7x8xf32>
    %49 = arith.truncf %48 : vector<4x7x8xf32> to vector<4x7x8xbf16>
    %50 = vector.shape_cast %43 : vector<7x32xf32> to vector<7x4x8xf32>
    %51 = tpu.transpose %50, [1, 0, 2] : vector<7x4x8xf32> -> vector<4x7x8xf32>
    %52 = arith.truncf %51 : vector<4x7x8xf32> to vector<4x7x8xbf16>
    %cst_23 = arith.constant dense<0.000000e+00> : vector<4x7x7xf32>
    %53 = tpu.matmul %46, %49, %cst_23 {dimension_numbers = #tpu.dot_dimension_numbers<[2], [2], [1], [1], [0, 0, 0, 1, 1, 1], [0], [0]>} : vector<4x7x8xbf16>, vector<4x7x8xbf16>, vector<4x7x7xf32> -> vector<4x7x7xf32>
    %54 = vector.shape_cast %6 : vector<1x7xf32> to vector<1x1x7xf32>
    %55 = vector.broadcast %54 : vector<1x1x7xf32> to vector<4x7x7xf32>
    %56 = arith.addf %53, %55 : vector<4x7x7xf32>
    %cst_24 = arith.constant dense<0xFF800000> : vector<4x7xf32>
    %57 = vector.multi_reduction <maximumf>, %56, %cst_24 [2] : vector<4x7x7xf32> to vector<4x7xf32>
    %58 = vector.shape_cast %57 : vector<4x7xf32> to vector<4x7x1xf32>
    %59 = vector.broadcast %58 : vector<4x7x1xf32> to vector<4x7x7xf32>
    %60 = arith.subf %56, %59 : vector<4x7x7xf32>
    %61 = math.exp %60 : vector<4x7x7xf32>
    %cst_25 = arith.constant dense<0.000000e+00> : vector<4x7xf32>
    %62 = vector.multi_reduction <add>, %61, %cst_25 [2] : vector<4x7x7xf32> to vector<4x7xf32>
    %63 = vector.shape_cast %62 : vector<4x7xf32> to vector<4x7x1xf32>
    %64 = tpu.reciprocal %63 {approx = true} : vector<4x7x1xf32> -> vector<4x7x1xf32>
    %65 = vector.broadcast %64 : vector<4x7x1xf32> to vector<4x7x7xf32>
    %66 = arith.mulf %61, %65 : vector<4x7x7xf32>
    %67 = arith.truncf %66 : vector<4x7x7xf32> to vector<4x7x7xbf16>
    %cst_26 = arith.constant dense<0.000000e+00> : vector<4x7x8xf32>
    %68 = tpu.matmul %67, %52, %cst_26 {dimension_numbers = #tpu.dot_dimension_numbers<[2], [1], [1], [2], [0, 0, 0, 1, 1, 2], [0], [0]>} : vector<4x7x7xbf16>, vector<4x7x8xbf16>, vector<4x7x8xf32> -> vector<4x7x8xf32>
    %69 = tpu.transpose %68, [1, 0, 2] : vector<4x7x8xf32> -> vector<7x4x8xf32>
    %70 = vector.shape_cast %69 : vector<7x4x8xf32> to vector<7x32xf32>
    %71 = arith.truncf %70 : vector<7x32xf32> to vector<7x32xbf16>
    %c0_27 = arith.constant 0 : index
    %c0_28 = arith.constant 0 : index
    %c0_29 = arith.constant 0 : index
    %72 = vector.load %arg8[%c0_27, %c0_28, %c0_29] : memref<1x32x32xbf16, #tpu.memory_space<vmem>>, vector<1x32x32xbf16>
    %73 = vector.shape_cast %72 : vector<1x32x32xbf16> to vector<32x32xbf16>
    %cst_30 = arith.constant dense<0.000000e+00> : vector<7x32xf32>
    %74 = tpu.matmul %71, %73, %cst_30 {dimension_numbers = #tpu.dot_dimension_numbers<[1], [0], [0], [1], [0, 0, 1, 1], [], []>} : vector<7x32xbf16>, vector<32x32xbf16>, vector<7x32xf32> -> vector<7x32xf32>
    %c0_31 = arith.constant 0 : index
    %c0_32 = arith.constant 0 : index
    %c0_33 = arith.constant 0 : index
    %75 = vector.load %arg9[%c0_31, %c0_32, %c0_33] : memref<1x1x32xf32, #tpu.memory_space<vmem>>, vector<1x1x32xf32>
    %76 = vector.shape_cast %75 : vector<1x1x32xf32> to vector<1x32xf32>
    %77 = vector.broadcast %76 : vector<1x32xf32> to vector<7x32xf32>
    %78 = arith.addf %74, %77 : vector<7x32xf32>
    %79 = arith.addf %4, %78 : vector<7x32xf32>
    %c0_34 = arith.constant 0 : index
    %c0_35 = arith.constant 0 : index
    %c0_36 = arith.constant 0 : index
    %80 = vector.load %arg10[%c0_34, %c0_35, %c0_36] : memref<1x1x32xf32, #tpu.memory_space<vmem>>, vector<1x1x32xf32>
    %81 = vector.shape_cast %80 : vector<1x1x32xf32> to vector<1x32xf32>
    %c0_37 = arith.constant 0 : index
    %c0_38 = arith.constant 0 : index
    %c0_39 = arith.constant 0 : index
    %82 = vector.load %arg11[%c0_37, %c0_38, %c0_39] : memref<1x1x32xf32, #tpu.memory_space<vmem>>, vector<1x1x32xf32>
    %83 = vector.shape_cast %82 : vector<1x1x32xf32> to vector<1x32xf32>
    %cst_40 = arith.constant dense<0.000000e+00> : vector<7xf32>
    %84 = vector.multi_reduction <add>, %79, %cst_40 [1] : vector<7x32xf32> to vector<7xf32>
    %85 = vector.shape_cast %84 : vector<7xf32> to vector<7x1xf32>
    %cst_41 = arith.constant 3.200000e+01 : f32
    %86 = vector.broadcast %cst_41 : f32 to vector<7x1xf32>
    %87 = arith.divf %85, %86 : vector<7x1xf32>
    %88 = vector.broadcast %87 : vector<7x1xf32> to vector<7x32xf32>
    %89 = arith.subf %79, %88 : vector<7x32xf32>
    %90 = arith.mulf %89, %89 : vector<7x32xf32>
    %cst_42 = arith.constant dense<0.000000e+00> : vector<7xf32>
    %91 = vector.multi_reduction <add>, %90, %cst_42 [1] : vector<7x32xf32> to vector<7xf32>
    %92 = vector.shape_cast %91 : vector<7xf32> to vector<7x1xf32>
    %cst_43 = arith.constant 3.200000e+01 : f32
    %93 = vector.broadcast %cst_43 : f32 to vector<7x1xf32>
    %94 = arith.divf %92, %93 : vector<7x1xf32>
    %95 = vector.broadcast %87 : vector<7x1xf32> to vector<7x32xf32>
    %96 = arith.subf %79, %95 : vector<7x32xf32>
    %cst_44 = arith.constant 9.99999996E-13 : f32
    %97 = vector.broadcast %cst_44 : f32 to vector<7x1xf32>
    %98 = arith.addf %94, %97 : vector<7x1xf32>
    %99 = math.rsqrt %98 : vector<7x1xf32>
    %100 = vector.broadcast %99 : vector<7x1xf32> to vector<7x32xf32>
    %101 = arith.mulf %96, %100 : vector<7x32xf32>
    %102 = vector.broadcast %81 : vector<1x32xf32> to vector<7x32xf32>
    %103 = arith.mulf %101, %102 : vector<7x32xf32>
    %104 = vector.broadcast %83 : vector<1x32xf32> to vector<7x32xf32>
    %105 = arith.addf %103, %104 : vector<7x32xf32>
    %106 = arith.truncf %105 : vector<7x32xf32> to vector<7x32xbf16>
    %c0_45 = arith.constant 0 : index
    %c0_46 = arith.constant 0 : index
    %c0_47 = arith.constant 0 : index
    %107 = vector.load %arg12[%c0_45, %c0_46, %c0_47] : memref<1x32x64xbf16, #tpu.memory_space<vmem>>, vector<1x32x64xbf16>
    %108 = vector.shape_cast %107 : vector<1x32x64xbf16> to vector<32x64xbf16>
    %cst_48 = arith.constant dense<0.000000e+00> : vector<7x64xf32>
    %109 = tpu.matmul %106, %108, %cst_48 {dimension_numbers = #tpu.dot_dimension_numbers<[1], [0], [0], [1], [0, 0, 1, 1], [], []>} : vector<7x32xbf16>, vector<32x64xbf16>, vector<7x64xf32> -> vector<7x64xf32>
    %c0_49 = arith.constant 0 : index
    %c0_50 = arith.constant 0 : index
    %c0_51 = arith.constant 0 : index
    %110 = vector.load %arg13[%c0_49, %c0_50, %c0_51] : memref<1x1x64xf32, #tpu.memory_space<vmem>>, vector<1x1x64xf32>
    %111 = vector.shape_cast %110 : vector<1x1x64xf32> to vector<1x64xf32>
    %112 = vector.broadcast %111 : vector<1x64xf32> to vector<7x64xf32>
    %113 = arith.addf %109, %112 : vector<7x64xf32>
    %cst_52 = arith.constant 0.000000e+00 : f32
    %114 = vector.broadcast %cst_52 : f32 to vector<7x64xf32>
    %115 = arith.maximumf %113, %114 : vector<7x64xf32>
    %116 = arith.truncf %115 : vector<7x64xf32> to vector<7x64xbf16>
    %c0_53 = arith.constant 0 : index
    %c0_54 = arith.constant 0 : index
    %c0_55 = arith.constant 0 : index
    %117 = vector.load %arg14[%c0_53, %c0_54, %c0_55] : memref<1x64x32xbf16, #tpu.memory_space<vmem>>, vector<1x64x32xbf16>
    %118 = vector.shape_cast %117 : vector<1x64x32xbf16> to vector<64x32xbf16>
    %cst_56 = arith.constant dense<0.000000e+00> : vector<7x32xf32>
    %119 = tpu.matmul %116, %118, %cst_56 {dimension_numbers = #tpu.dot_dimension_numbers<[1], [0], [0], [1], [0, 0, 1, 1], [], []>} : vector<7x64xbf16>, vector<64x32xbf16>, vector<7x32xf32> -> vector<7x32xf32>
    %c0_57 = arith.constant 0 : index
    %c0_58 = arith.constant 0 : index
    %c0_59 = arith.constant 0 : index
    %120 = vector.load %arg15[%c0_57, %c0_58, %c0_59] : memref<1x1x32xf32, #tpu.memory_space<vmem>>, vector<1x1x32xf32>
    %121 = vector.shape_cast %120 : vector<1x1x32xf32> to vector<1x32xf32>
    %122 = vector.broadcast %121 : vector<1x32xf32> to vector<7x32xf32>
    %123 = arith.addf %119, %122 : vector<7x32xf32>
    %124 = arith.addf %79, %123 : vector<7x32xf32>
    %c1_i32 = arith.constant 1 : i32
    %125 = arith.cmpi slt, %arg1, %c1_i32 : i32
    %126 = arith.extui %125 : i1 to i32
    %c0_i32_60 = arith.constant 0 : i32
    %127 = arith.cmpi ne, %126, %c0_i32_60 : i32
    scf.if %127 {
      %c0_63 = arith.constant 0 : index
      %c0_64 = arith.constant 0 : index
      %c0_65 = arith.constant 0 : index
      %131 = vector.load %arg18[%c0_63, %c0_64, %c0_65] : memref<1x7x32xf32, #tpu.memory_space<vmem>>, vector<1x7x32xf32>
      %132 = vector.shape_cast %131 : vector<1x7x32xf32> to vector<7x32xf32>
      %133 = vector.shape_cast %124 : vector<7x32xf32> to vector<1x7x32xf32>
      tpu.vector_store %arg18[%c0_63, %c0_64, %c0_65], %133 {strides = array<i32>} : memref<1x7x32xf32, #tpu.memory_space<vmem>>, vector<1x7x32xf32>,
    } else {
    }
    %c1_i32_61 = arith.constant 1 : i32
    %128 = arith.cmpi eq, %arg1, %c1_i32_61 : i32
    %129 = arith.extui %128 : i1 to i32
    %c0_i32_62 = arith.constant 0 : i32
    %130 = arith.cmpi ne, %129, %c0_i32_62 : i32
    scf.if %130 {
      %c0_63 = arith.constant 0 : index
      %c0_64 = arith.constant 0 : index
      %131 = vector.load %arg16[%c0_63, %c0_64] : memref<1x32xf32, #tpu.memory_space<vmem>>, vector<1x32xf32>
      %c0_65 = arith.constant 0 : index
      %c0_66 = arith.constant 0 : index
      %132 = vector.load %arg17[%c0_65, %c0_66] : memref<1x32xf32, #tpu.memory_space<vmem>>, vector<1x32xf32>
      %cst_67 = arith.constant dense<0.000000e+00> : vector<7xf32>
      %133 = vector.multi_reduction <add>, %124, %cst_67 [1] : vector<7x32xf32> to vector<7xf32>
      %134 = vector.shape_cast %133 : vector<7xf32> to vector<7x1xf32>
      %cst_68 = arith.constant 3.200000e+01 : f32
      %135 = vector.broadcast %cst_68 : f32 to vector<7x1xf32>
      %136 = arith.divf %134, %135 : vector<7x1xf32>
      %137 = vector.broadcast %136 : vector<7x1xf32> to vector<7x32xf32>
      %138 = arith.subf %124, %137 : vector<7x32xf32>
      %139 = arith.mulf %138, %138 : vector<7x32xf32>
      %cst_69 = arith.constant dense<0.000000e+00> : vector<7xf32>
      %140 = vector.multi_reduction <add>, %139, %cst_69 [1] : vector<7x32xf32> to vector<7xf32>
      %141 = vector.shape_cast %140 : vector<7xf32> to vector<7x1xf32>
      %cst_70 = arith.constant 3.200000e+01 : f32
      %142 = vector.broadcast %cst_70 : f32 to vector<7x1xf32>
      %143 = arith.divf %141, %142 : vector<7x1xf32>
      %144 = vector.broadcast %136 : vector<7x1xf32> to vector<7x32xf32>
      %145 = arith.subf %124, %144 : vector<7x32xf32>
      %cst_71 = arith.constant 9.99999996E-13 : f32
      %146 = vector.broadcast %cst_71 : f32 to vector<7x1xf32>
      %147 = arith.addf %143, %146 : vector<7x1xf32>
      %148 = math.rsqrt %147 : vector<7x1xf32>
      %149 = vector.broadcast %148 : vector<7x1xf32> to vector<7x32xf32>
      %150 = arith.mulf %145, %149 : vector<7x32xf32>
      %151 = vector.broadcast %131 : vector<1x32xf32> to vector<7x32xf32>
      %152 = arith.mulf %150, %151 : vector<7x32xf32>
      %153 = vector.broadcast %132 : vector<1x32xf32> to vector<7x32xf32>
      %154 = arith.addf %152, %153 : vector<7x32xf32>
      %c0_72 = arith.constant 0 : index
      %c0_73 = arith.constant 0 : index
      %c0_74 = arith.constant 0 : index
      %155 = vector.load %arg18[%c0_72, %c0_73, %c0_74] : memref<1x7x32xf32, #tpu.memory_space<vmem>>, vector<1x7x32xf32>
      %156 = vector.shape_cast %155 : vector<1x7x32xf32> to vector<7x32xf32>
      %157 = vector.shape_cast %154 : vector<7x32xf32> to vector<1x7x32xf32>
      tpu.vector_store %arg18[%c0_72, %c0_73, %c0_74], %157 {strides = array<i32>} : memref<1x7x32xf32, #tpu.memory_space<vmem>>, vector<1x7x32xf32>,
    } else {
    }
    return
  }
  func.func @transform_0(%arg0: i32, %arg1: i32) -> (i32, i32, i32) {
    %c0_i32 = arith.constant 0 : i32
    %c0_i32_0 = arith.constant 0 : i32
    %c0_i32_1 = arith.constant 0 : i32
    return %arg0, %c0_i32, %c0_i32_0 : i32, i32, i32
  }
  func.func @transform_1(%arg0: i32, %arg1: i32) -> (i32, i32, i32) {
    %c0_i32 = arith.constant 0 : i32
    %c0_i32_0 = arith.constant 0 : i32
    %c0_i32_1 = arith.constant 0 : i32
    return %arg0, %c0_i32, %c0_i32_0 : i32, i32, i32
  }
  func.func @transform_2(%arg0: i32, %arg1: i32) -> (i32, i32, i32) {
    %c0_i32 = arith.constant 0 : i32
    %c0_i32_0 = arith.constant 0 : i32
    %c0_i32_1 = arith.constant 0 : i32
    return %arg1, %c0_i32, %c0_i32_0 : i32, i32, i32
  }
  func.func @transform_3(%arg0: i32, %arg1: i32) -> (i32, i32, i32) {
    %c0_i32 = arith.constant 0 : i32
    %c0_i32_0 = arith.constant 0 : i32
    %c0_i32_1 = arith.constant 0 : i32
    return %arg1, %c0_i32, %c0_i32_0 : i32, i32, i32
  }
  func.func @transform_4(%arg0: i32, %arg1: i32) -> (i32, i32, i32) {
    %c0_i32 = arith.constant 0 : i32
    %c0_i32_0 = arith.constant 0 : i32
    %c0_i32_1 = arith.constant 0 : i32
    return %arg1, %c0_i32, %c0_i32_0 : i32, i32, i32
  }
  func.func @transform_5(%arg0: i32, %arg1: i32) -> (i32, i32, i32) {
    %c0_i32 = arith.constant 0 : i32
    %c0_i32_0 = arith.constant 0 : i32
    %c0_i32_1 = arith.constant 0 : i32
    return %arg1, %c0_i32, %c0_i32_0 : i32, i32, i32
  }
  func.func @transform_6(%arg0: i32, %arg1: i32) -> (i32, i32, i32) {
    %c0_i32 = arith.constant 0 : i32
    %c0_i32_0 = arith.constant 0 : i32
    %c0_i32_1 = arith.constant 0 : i32
    return %arg1, %c0_i32, %c0_i32_0 : i32, i32, i32
  }
  func.func @transform_7(%arg0: i32, %arg1: i32) -> (i32, i32, i32) {
    %c0_i32 = arith.constant 0 : i32
    %c0_i32_0 = arith.constant 0 : i32
    %c0_i32_1 = arith.constant 0 : i32
    return %arg1, %c0_i32, %c0_i32_0 : i32, i32, i32
  }
  func.func @transform_8(%arg0: i32, %arg1: i32) -> (i32, i32, i32) {
    %c0_i32 = arith.constant 0 : i32
    %c0_i32_0 = arith.constant 0 : i32
    %c0_i32_1 = arith.constant 0 : i32
    return %arg1, %c0_i32, %c0_i32_0 : i32, i32, i32
  }
  func.func @transform_9(%arg0: i32, %arg1: i32) -> (i32, i32, i32) {
    %c0_i32 = arith.constant 0 : i32
    %c0_i32_0 = arith.constant 0 : i32
    %c0_i32_1 = arith.constant 0 : i32
    return %arg1, %c0_i32, %c0_i32_0 : i32, i32, i32
  }
  func.func @transform_10(%arg0: i32, %arg1: i32) -> (i32, i32, i32) {
    %c0_i32 = arith.constant 0 : i32
    %c0_i32_0 = arith.constant 0 : i32
    %c0_i32_1 = arith.constant 0 : i32
    return %arg1, %c0_i32, %c0_i32_0 : i32, i32, i32
  }
  func.func @transform_11(%arg0: i32, %arg1: i32) -> (i32, i32, i32) {
    %c0_i32 = arith.constant 0 : i32
    %c0_i32_0 = arith.constant 0 : i32
    %c0_i32_1 = arith.constant 0 : i32
    return %arg1, %c0_i32, %c0_i32_0 : i32, i32, i32
  }
  func.func @transform_12(%arg0: i32, %arg1: i32) -> (i32, i32, i32) {
    %c0_i32 = arith.constant 0 : i32
    %c0_i32_0 = arith.constant 0 : i32
    %c0_i32_1 = arith.constant 0 : i32
    return %arg1, %c0_i32, %c0_i32_0 : i32, i32, i32
  }
  func.func @transform_13(%arg0: i32, %arg1: i32) -> (i32, i32, i32) {
    %c0_i32 = arith.constant 0 : i32
    %c0_i32_0 = arith.constant 0 : i32
    %c0_i32_1 = arith.constant 0 : i32
    return %arg1, %c0_i32, %c0_i32_0 : i32, i32, i32
  }
  func.func @transform_14(%arg0: i32, %arg1: i32) -> (i32, i32) {
    %c0_i32 = arith.constant 0 : i32
    %c0_i32_0 = arith.constant 0 : i32
    %c0_i32_1 = arith.constant 0 : i32
    return %c0_i32, %c0_i32_0 : i32, i32
  }
  func.func @transform_15(%arg0: i32, %arg1: i32) -> (i32, i32) {
    %c0_i32 = arith.constant 0 : i32
    %c0_i32_0 = arith.constant 0 : i32
    %c0_i32_1 = arith.constant 0 : i32
    return %c0_i32, %c0_i32_0 : i32, i32
  }
  func.func @transform_16(%arg0: i32, %arg1: i32) -> (i32, i32, i32) {
    %c0_i32 = arith.constant 0 : i32
    %c0_i32_0 = arith.constant 0 : i32
    %c0_i32_1 = arith.constant 0 : i32
    return %arg0, %c0_i32, %c0_i32_0 : i32, i32, i32
  }
}

</mosaic_0001>

<bundles_post_ra>
// kernel: encoder_forward.4
= control target key start
LH: loop header
LB: loop body
LE: loop exit
PB: predicated region body
PF: predicated region fallthrough
CT: control target
= control target key end

     0   :  { %vm170_vm0 = vcmask 1043456   ;;  %vm171_vm1 = vcmask 1044480   ;;  %vm127_vm2 = vcmask 72704   ;;  %v476_v1 = vmov 65535   ;;  %s701_s1 = inlined_call_operand.vmem [shape: bf16[9,32], index: 1, kind: input, shape index: {}]   ;;  %s702_s0 = inlined_call_operand.vmem [shape: bf16[224,9], index: 0, kind: input, shape index: {}]   ;;  %s703_s2 = inlined_call_operand.vmem [shape: f32[1,32], index: 2, kind: input, shape index: {}]   ;;  %s704_s3 = inlined_call_operand.vmem [shape: f32[224,32], index: 3, kind: output, shape index: {}]  }
   0x1   :  { %v461_v0 = vld [vmem:[%s701_s1] sm:$0x1f]   ;;  %v172_v2 = vsel %vm170_vm0, 4294967295, %v476_v1  ;;  %v463_v7 = vld [vmem:[%s702_s0 + $0x8] sm:$0xff]   ;;  %v466_v9 = vld [vmem:[%s702_s0 + $0x10] sm:$0xff]   ;;  %vm350_vm3 = vcmask 261120  }
   0x2   :  { %v462_v3 = vld [vmem:[%s702_s0] sm:$0xff]   ;;  %v173_v4 = vsel %vm171_vm1, %v172_v2, 0  ;;  %v465_v8 = vld [vmem:[%s702_s0 + $0x48] sm:$0xff]   ;;  %v468_v10 = vld [vmem:[%s702_s0 + $0x50] sm:$0xff]  }
   0x3   :  { %v175_v5 = vand.u32 %v461_v0, %v173_v4  ;;  %430 = vmatprep.mubr.msk.bf16.mxu0 %vm127_vm2, %v462_v3  ;;  %v464_v6 = vld [vmem:[%s702_s0 + $0x40] sm:$0xff]   ;;  %v467_v11 = vld [vmem:[%s702_s0 + $0x18] sm:$0xff]   ;;  %v471_v15 = vld [vmem:[%s702_s0 + $0x28] sm:$0xff]  }
   0x4   :  { %446 = vmatprep.mubr.msk.bf16.mxu1 %vm127_vm2, %v464_v6  ;;  %v469_v12 = vld [vmem:[%s702_s0 + $0x58] sm:$0xff]   ;;  %v470_v13 = vld [vmem:[%s702_s0 + $0x20] sm:$0xff]   ;;  %v473_v16 = vld [vmem:[%s702_s0 + $0x68] sm:$0xff]  }
   0x5   :  { %428 = vmatprep.subr.bf16.mxu0 %v175_v5  ;;  %458 = vmatprep.subr.bf16.mxu1 %v175_v5  ;;  %v472_v14 = vld [vmem:[%s702_s0 + $0x60] sm:$0xff]   ;;  %v474_v17 = vld [vmem:[%s702_s0 + $0x30] sm:$0xff]   ;;  %v475_v18 = vld [vmem:[%s702_s0 + $0x38] sm:$0xff]  }
   0x6   :  { %429 = vmatpush3.bf16.msra.mxu0 %v175_v5  ;;  %459 = vmatpush3.bf16.msra.mxu1 %v175_v5  ;;  %v559_v19 = vld [vmem:[%s703_s2] ss:$0 sm:$0xff] }
   0x9   :  { %431 = vmatmul.mubr.msk.bf16.vlgmr.msra.gmra.mxu0 %vm127_vm2, %v463_v7  ;;  %447 = vmatmul.mubr.msk.bf16.vlgmr.msra.gmra.mxu1 %vm127_vm2, %v465_v8 }
   0xa   :  { %434 = vmatprep.mubr.msk.bf16.mxu0 %vm127_vm2, %v466_v9  ;;  %450 = vmatprep.mubr.msk.bf16.mxu1 %vm127_vm2, %v468_v10 }
  0x11   :  { %435 = vmatmul.mubr.msk.bf16.gmra.mxu0 %vm127_vm2, %v467_v11  ;;  %451 = vmatmul.mubr.msk.bf16.gmra.mxu1 %vm127_vm2, %v469_v12 }
  0x12   :  { %438 = vmatprep.mubr.msk.bf16.mxu0 %vm127_vm2, %v470_v13  ;;  %454 = vmatprep.mubr.msk.bf16.mxu1 %vm127_vm2, %v472_v14 }
  0x19   :  { %439 = vmatmul.mubr.msk.bf16.gmra.mxu0 %vm127_vm2, %v471_v15  ;;  %455 = vmatmul.mubr.msk.bf16.gmra.mxu1 %vm127_vm2, %v473_v16 }
  0x1a   :  { %442 = vmatprep.mubr.msk.bf16.mxu0 %vm127_vm2, %v474_v17 }
  0x21   :  { %443 = vmatmul.mubr.msk.bf16.gmra.mxu0 %vm127_vm2, %v475_v18 }
  0xc9   :  { %v432_v20 = vpop.f32.mrf.mxu0  ;;  %v448_v21 = vpop.f32.mrf.mxu1 }
  0xca   :  { %v220_v22 = vadd.f32 %v432_v20, %v559_v19  ;;  %v284_v23 = vadd.f32 %v448_v21, %v559_v19 }
  0xcb   :  { %v211_v24 = vpop.f32.mrf.mxu0  ;;  %v275_v25 = vpop.f32.mrf.mxu1 }
  0xcc   :  { %v324_v26 = vmax.f32 %v220_v22, 0.0  ;;  %v212_v27 = vadd.f32 %v559_v19, %v211_v24  ;;  %v340_v28 = vmax.f32 %v284_v23, 0.0  ;;  %v276_v29 = vadd.f32 %v559_v19, %v275_v25 }
  0xcd   :  { %v433_v30 = vpop.f32.mrf.mxu0  ;;  %v449_v31 = vpop.f32.mrf.mxu1 }
  0xce   :  { %353 = vst.msk [vmem:[%s704_s3 + $0x10] sm:$0xff] %vm350_vm3, %v324_v26  ;;  %v322_v32 = vmax.f32 %v212_v27, 0.0  ;;  %369 = vst.msk [vmem:[%s704_s3 + $0x90] sm:$0xff] %vm350_vm3, %v340_v28  ;;  %v223_v33 = vadd.f32 %v433_v30, %v559_v19  ;;  %v338_v34 = vmax.f32 %v276_v29, 0.0  ;;  %v287_v35 = vadd.f32 %v449_v31, %v559_v19 }
  0xcf   :  { %v214_v36 = vpop.f32.mrf.mxu0  ;;  %v278_v37 = vpop.f32.mrf.mxu1 }
  0xd0   :  { %351 = vst.msk [vmem:[%s704_s3] sm:$0xff] %vm350_vm3, %v322_v32  ;;  %v325_v38 = vmax.f32 %v223_v33, 0.0  ;;  %367 = vst.msk [vmem:[%s704_s3 + $0x80] sm:$0xff] %vm350_vm3, %v338_v34  ;;  %v215_v39 = vadd.f32 %v559_v19, %v214_v36  ;;  %v341_v40 = vmax.f32 %v287_v35, 0.0  ;;  %v279_v41 = vadd.f32 %v559_v19, %v278_v37 }
  0xd1   :  { %v436_v42 = vpop.f32.mrf.mxu0  ;;  %v452_v43 = vpop.f32.mrf.mxu1 }
  0xd2   :  { %354 = vst.msk [vmem:[%s704_s3 + $0x18] sm:$0xff] %vm350_vm3, %v325_v38  ;;  %v323_v44 = vmax.f32 %v215_v39, 0.0  ;;  %370 = vst.msk [vmem:[%s704_s3 + $0x98] sm:$0xff] %vm350_vm3, %v341_v40  ;;  %v236_v45 = vadd.f32 %v436_v42, %v559_v19  ;;  %v339_v46 = vmax.f32 %v279_v41, 0.0  ;;  %v300_v47 = vadd.f32 %v452_v43, %v559_v19 }
  0xd3   :  { %v227_v48 = vpop.f32.mrf.mxu0  ;;  %v291_v49 = vpop.f32.mrf.mxu1 }
  0xd4   :  { %352 = vst.msk [vmem:[%s704_s3 + $0x8] sm:$0xff] %vm350_vm3, %v323_v44  ;;  %v328_v50 = vmax.f32 %v236_v45, 0.0  ;;  %368 = vst.msk [vmem:[%s704_s3 + $0x88] sm:$0xff] %vm350_vm3, %v339_v46  ;;  %v228_v51 = vadd.f32 %v559_v19, %v227_v48  ;;  %v344_v52 = vmax.f32 %v300_v47, 0.0  ;;  %v292_v53 = vadd.f32 %v559_v19, %v291_v49 }
  0xd5   :  { %v437_v54 = vpop.f32.mrf.mxu0  ;;  %v453_v55 = vpop.f32.mrf.mxu1 }
  0xd6   :  { %357 = vst.msk [vmem:[%s704_s3 + $0x30] sm:$0xff] %vm350_vm3, %v328_v50  ;;  %v326_v56 = vmax.f32 %v228_v51, 0.0  ;;  %373 = vst.msk [vmem:[%s704_s3 + $0xb0] sm:$0xff] %vm350_vm3, %v344_v52  ;;  %v239_v57 = vadd.f32 %v437_v54, %v559_v19  ;;  %v342_v58 = vmax.f32 %v292_v53, 0.0  ;;  %v303_v59 = vadd.f32 %v453_v55, %v559_v19 }
  0xd7   :  { %v230_v60 = vpop.f32.mrf.mxu0  ;;  %v294_v61 = vpop.f32.mrf.mxu1 }
  0xd8   :  { %355 = vst.msk [vmem:[%s704_s3 + $0x20] sm:$0xff] %vm350_vm3, %v326_v56  ;;  %v329_v62 = vmax.f32 %v239_v57, 0.0  ;;  %371 = vst.msk [vmem:[%s704_s3 + $0xa0] sm:$0xff] %vm350_vm3, %v342_v58  ;;  %v231_v63 = vadd.f32 %v559_v19, %v230_v60  ;;  %v345_v0 = vmax.f32 %v303_v59, 0.0  ;;  %v295_v1 = vadd.f32 %v559_v19, %v294_v61 }
  0xd9   :  { %v440_v2 = vpop.f32.mrf.mxu0  ;;  %v456_v3 = vpop.f32.mrf.mxu1 }
  0xda   :  { %358 = vst.msk [vmem:[%s704_s3 + $0x38] sm:$0xff] %vm350_vm3, %v329_v62  ;;  %v327_v4 = vmax.f32 %v231_v63, 0.0  ;;  %374 = vst.msk [vmem:[%s704_s3 + $0xb8] sm:$0xff] %vm350_vm3, %v345_v0  ;;  %v252_v5 = vadd.f32 %v440_v2, %v559_v19  ;;  %v343_v6 = vmax.f32 %v295_v1, 0.0  ;;  %v316_v7 = vadd.f32 %v456_v3, %v559_v19 }
  0xdb   :  { %v243_v8 = vpop.f32.mrf.mxu0  ;;  %v307_v9 = vpop.f32.mrf.mxu1 }
  0xdc   :  { %356 = vst.msk [vmem:[%s704_s3 + $0x28] sm:$0xff] %vm350_vm3, %v327_v4  ;;  %v332_v10 = vmax.f32 %v252_v5, 0.0  ;;  %372 = vst.msk [vmem:[%s704_s3 + $0xa8] sm:$0xff] %vm350_vm3, %v343_v6  ;;  %v244_v11 = vadd.f32 %v559_v19, %v243_v8  ;;  %v348_v12 = vmax.f32 %v316_v7, 0.0  ;;  %v308_v13 = vadd.f32 %v559_v19, %v307_v9 }
  0xdd   :  { %v441_v14 = vpop.f32.mrf.mxu0  ;;  %v457_v15 = vpop.f32.mrf.mxu1 }
  0xde   :  { %361 = vst.msk [vmem:[%s704_s3 + $0x50] sm:$0xff] %vm350_vm3, %v332_v10  ;;  %v330_v16 = vmax.f32 %v244_v11, 0.0  ;;  %377 = vst.msk [vmem:[%s704_s3 + $0xd0] sm:$0xff] %vm350_vm3, %v348_v12  ;;  %v255_v17 = vadd.f32 %v441_v14, %v559_v19  ;;  %v346_v18 = vmax.f32 %v308_v13, 0.0  ;;  %v319_v20 = vadd.f32 %v457_v15, %v559_v19 }
  0xdf   :  { %v246_v21 = vpop.f32.mrf.mxu0  ;;  %v310_v22 = vpop.f32.mrf.mxu1 }
  0xe0   :  { %359 = vst.msk [vmem:[%s704_s3 + $0x40] sm:$0xff] %vm350_vm3, %v330_v16  ;;  %v333_v23 = vmax.f32 %v255_v17, 0.0  ;;  %375 = vst.msk [vmem:[%s704_s3 + $0xc0] sm:$0xff] %vm350_vm3, %v346_v18  ;;  %v247_v24 = vadd.f32 %v559_v19, %v246_v21  ;;  %v349_v25 = vmax.f32 %v319_v20, 0.0  ;;  %v311_v26 = vadd.f32 %v559_v19, %v310_v22 }
  0xe1   :  { %v444_v27 = vpop.f32.mrf.mxu0 }
  0xe2   :  { %362 = vst.msk [vmem:[%s704_s3 + $0x58] sm:$0xff] %vm350_vm3, %v333_v23  ;;  %v331_v28 = vmax.f32 %v247_v24, 0.0  ;;  %378 = vst.msk [vmem:[%s704_s3 + $0xd8] sm:$0xff] %vm350_vm3, %v349_v25  ;;  %v268_v29 = vadd.f32 %v444_v27, %v559_v19  ;;  %v347_v30 = vmax.f32 %v311_v26, 0.0 }
  0xe3   :  { %v259_v31 = vpop.f32.mrf.mxu0 }
  0xe4   :  { %360 = vst.msk [vmem:[%s704_s3 + $0x48] sm:$0xff] %vm350_vm3, %v331_v28  ;;  %v336_v32 = vmax.f32 %v268_v29, 0.0  ;;  %376 = vst.msk [vmem:[%s704_s3 + $0xc8] sm:$0xff] %vm350_vm3, %v347_v30  ;;  %v260_v33 = vadd.f32 %v559_v19, %v259_v31 }
  0xe5   :  { %v445_v34 = vpop.f32.mrf.mxu0 }
  0xe6   :  { %365 = vst.msk [vmem:[%s704_s3 + $0x70] sm:$0xff] %vm350_vm3, %v336_v32  ;;  %v334_v35 = vmax.f32 %v260_v33, 0.0  ;;  %v271_v36 = vadd.f32 %v445_v34, %v559_v19 }
  0xe7   :  { %v262_v37 = vpop.f32.mrf.mxu0 }
  0xe8   :  { %363 = vst.msk [vmem:[%s704_s3 + $0x60] sm:$0xff] %vm350_vm3, %v334_v35  ;;  %v337_v38 = vmax.f32 %v271_v36, 0.0  ;;  %v263_v39 = vadd.f32 %v559_v19, %v262_v37 }
  0xea   :  { %366 = vst.msk [vmem:[%s704_s3 + $0x78] sm:$0xff] %vm350_vm3, %v337_v38  ;;  %v335_v40 = vmax.f32 %v263_v39, 0.0 }
  0xec   :  { %364 = vst.msk [vmem:[%s704_s3 + $0x68] sm:$0xff] %vm350_vm3, %v335_v40 }

// kernel: encoder_forward.6
= control target key start
LH: loop header
LB: loop body
LE: loop exit
PB: predicated region body
PF: predicated region fallthrough
CT: control target
= control target key end

     0   :  { %v171_v0 = vmov 0.0   ;;  %vm172_vm0 = vmmov 0   ;;  %vm77_vm1 = vcmask 785408   ;;  %vm122_vm2 = vcmask 261120   ;;  %s223_s1 = inlined_call_operand.vmem [shape: bf16[96,32], index: 1, kind: input, shape index: {}]   ;;  %s224_s0 = inlined_call_operand.vmem [shape: bf16[14,96], index: 0, kind: input, shape index: {}]   ;;  %s225_s2 = inlined_call_operand.vmem [shape: f32[1,32], index: 2, kind: input, shape index: {}]   ;;  %s226_s3 = inlined_call_operand.vmem [shape: f32[14,32], index: 3, kind: output, shape index: {}]  }
   0x1   :  { %146 = vmatprep.subr.bf16.mxu0 %v171_v0  ;;  %v164_v1 = vld [vmem:[%s223_s1 + $0x28] sm:$0xff]   ;;  %158 = vmatprep.mubr.msk.bf16.mxu0 %vm172_vm0, %v171_v0  ;;  %v165_v2 = vld [vmem:[%s223_s1 + $0x20] sm:$0xff]   ;;  %v166_v3 = vld [vmem:[%s223_s1 + $0x18] sm:$0xff]   ;;  %vm124_vm3 = vcmask 259072  }
   0x2   :  { %147 = vmatpush3.bf16.msra.mxu0 %v164_v1  ;;  %v167_v4 = vld [vmem:[%s223_s1 + $0x10] sm:$0xff]   ;;  %v168_v5 = vld [vmem:[%s223_s1 + $0x8] sm:$0xff]   ;;  %v169_v6 = vld [vmem:[%s223_s1] sm:$0xff]  }
   0x3   :  { %148 = vmatprep.subr.bf16.mxu0 %v171_v0  ;;  %v170_v7 = vld [vmem:[%s224_s0] sm:$0x7f]  }
   0x4   :  { %v130_v8 = vld [vmem:[%s225_s2] ss:$0 sm:$0xff] }
   0x6   :  { %149 = vmatpush3.bf16.msra.mxu0 %v165_v2 }
   0x7   :  { %150 = vmatprep.subr.bf16.mxu0 %v171_v0 }
   0xa   :  { %151 = vmatpush3.bf16.msra.mxu0 %v166_v3 }
   0xb   :  { %152 = vmatprep.subr.bf16.mxu0 %v171_v0 }
   0xe   :  { %153 = vmatpush3.bf16.msra.mxu0 %v167_v4 }
   0xf   :  { %154 = vmatprep.subr.bf16.mxu0 %v171_v0 }
  0x12   :  { %155 = vmatpush3.bf16.msra.mxu0 %v168_v5 }
  0x13   :  { %156 = vmatprep.subr.bf16.mxu0 %v171_v0 }
  0x16   :  { %157 = vmatpush3.bf16.msra.mxu0 %v169_v6 }
  0x19   :  { %159 = vmatmul.mubr.msk.bf16.vlgmr.msra.gmra.mxu0 %vm77_vm1, %v170_v7 }
  0xd9   :  { %v115_v9 = vpop.f32.mrf.mxu0 }
  0xda   :  { %v116_v10 = vadd.f32 %v130_v8, %v115_v9 }
  0xdb   :  { %v160_v11 = vpop.f32.mrf.mxu0 }
  0xdc   :  { %123 = vst.msk [vmem:[%s226_s3] sm:$0xff] %vm122_vm2, %v116_v10 }
  0xdd   :  { %v118_v12 = vpop.f32.mrf.mxu0 }
  0xde   :  { %v119_v13 = vadd.f32 %v130_v8, %v118_v12 }
  0xdf   :  { %v161_v14 = vpop.f32.mrf.mxu0 }
  0xe0   :  { %125 = vst.msk [vmem:[%s226_s3 + $0x8] sm:$0x3f] %vm124_vm3, %v119_v13 }

// kernel: encoder_forward.5
= control target key start
LH: loop header
LB: loop body
LE: loop exit
PB: predicated region body
PF: predicated region fallthrough
CT: control target
= control target key end

     0   :  { %v482_v1 = vmov 0.0   ;;  %vm483_vm0 = vmmov 0   ;;  %vm223_vm1 = vcmask 261120   ;;  %vm358_vm2 = vcmask 254976   ;;  %s617_s1 = inlined_call_operand.vmem [shape: bf16[288,32], index: 1, kind: input, shape index: {}]   ;;  %s618_s0 = inlined_call_operand.vmem [shape: bf16[42,288], index: 0, kind: input, shape index: {}]   ;;  %s619_s2 = inlined_call_operand.vmem [shape: f32[1,32], index: 2, kind: input, shape index: {}]   ;;  %s620_s3 = inlined_call_operand.vmem [shape: f32[42,32], index: 3, kind: output, shape index: {}]  }
   0x1   :  { %v452_v0 = vld [vmem:[%s617_s1 + $0x78] sm:$0xff]   ;;  %434 = vmatprep.subr.bf16.mxu1 %v482_v1  ;;  %438 = vmatprep.mubr.msk.bf16.mxu1 %vm483_vm0, %v482_v1  ;;  %v454_v3 = vld [vmem:[%s617_s1 + $0x70] sm:$0xff]   ;;  %v456_v5 = vld [vmem:[%s617_s1 + $0x68] sm:$0xff]  }
   0x2   :  { %v453_v2 = vld [vmem:[%s617_s1 + $0x38] sm:$0xff]   ;;  %395 = vmatprep.subr.bf16.mxu0 %v452_v0  ;;  %v455_v4 = vld [vmem:[%s617_s1 + $0x30] sm:$0xff]   ;;  %v457_v6 = vld [vmem:[%s617_s1 + $0x28] sm:$0xff]  }
   0x3   :  { %396 = vmatpush3.bf16.msra.mxu0 %v453_v2  ;;  %v458_v7 = vld [vmem:[%s617_s1 + $0x60] sm:$0xff]   ;;  %v460_v9 = vld [vmem:[%s617_s1 + $0x58] sm:$0xff]   ;;  %v466_v10 = vld [vmem:[%s617_s1 + $0x88] sm:$0xff]  }
   0x4   :  { %397 = vmatprep.subr.bf16.mxu0 %v454_v3  ;;  %v459_v8 = vld [vmem:[%s617_s1 + $0x20] sm:$0xff]   ;;  %v461_v11 = vld [vmem:[%s617_s1 + $0x18] sm:$0xff]   ;;  %v462_v12 = vld [vmem:[%s617_s1 + $0x50] sm:$0xff]   ;;  %435 = vmatpush3.bf16.msra.mxu1 %v466_v10 }
   0x5   :  { %v463_v13 = vld [vmem:[%s617_s1 + $0x10] sm:$0xff]   ;;  %436 = vmatprep.subr.bf16.mxu1 %v482_v1  ;;  %v469_v14 = vld [vmem:[%s617_s1 + $0x80] sm:$0xff]   ;;  %v464_v15 = vld [vmem:[%s617_s1 + $0x48] sm:$0xff]  }
   0x6   :  { %v472_v16 = vld [vmem:[%s618_s0 + $0x4] ss:$12 sps:$4 sm:$0xff]   ;;  %v473_v17 = vld [vmem:[%s618_s0 + $0x8] ss:$12 sps:$4 sm:$0xff]   ;;  %v477_v21 = vld [vmem:[%s618_s0 + $0x20] ss:$12 sps:$4 sm:$0xff]  }
   0x7   :  { %398 = vmatpush3.bf16.msra.mxu0 %v455_v4  ;;  %265 = vmatprep.mubr.bf16.mxu0 %v472_v16  ;;  %v465_v18 = vld [vmem:[%s617_s1 + $0x8] sm:$0xff]   ;;  %v467_v19 = vld [vmem:[%s617_s1 + $0x40] sm:$0xff]   ;;  %v480_v27 = vld [vmem:[%s618_s0 + $0x30] ss:$12 sps:$4 sm:$0x1f]  }
   0x8   :  { %399 = vmatprep.subr.bf16.mxu0 %v456_v5  ;;  %437 = vmatpush3.bf16.msra.mxu1 %v469_v14  ;;  %v468_v20 = vld [vmem:[%s617_s1] sm:$0xff]   ;;  %v474_v23 = vld [vmem:[%s618_s0 + $0x1c] ss:$12 sps:$4 sm:$0xff]  }
   0x9   :  { %v470_v22 = vld [vmem:[%s618_s0] ss:$12 sps:$4 sm:$0xff]   ;;  %v481_v24 = vld [vmem:[%s618_s0 + $0x38] ss:$12 sps:$4 sm:$0x1f]  }
   0xa   :  { %v476_v25 = vld [vmem:[%s618_s0 + $0x18] ss:$12 sps:$4 sm:$0xff]   ;;  %v478_v26 = vld [vmem:[%s618_s0 + $0x34] ss:$12 sps:$4 sm:$0x1f]  }
   0xb   :  { %400 = vmatpush3.bf16.msra.mxu0 %v457_v6  ;;  %439 = vmatmul.mubr.msk.bf16.vlgmr.msra.gmra.mxu1 %vm223_vm1, %v473_v17  ;;  %v364_v36 = vld [vmem:[%s619_s2] ss:$0 sm:$0xff] }
   0xc   :  { %401 = vmatprep.subr.bf16.mxu0 %v458_v7  ;;  %442 = vmatprep.mubr.msk.bf16.mxu1 %vm483_vm0, %v482_v1 }
   0xf   :  { %402 = vmatpush3.bf16.msra.mxu0 %v459_v8 }
  0x10   :  { %403 = vmatprep.subr.bf16.mxu0 %v460_v9 }
  0x13   :  { %404 = vmatpush3.bf16.msra.mxu0 %v461_v11  ;;  %443 = vmatmul.mubr.msk.bf16.gmra.mxu1 %vm223_vm1, %v477_v21 }
  0x14   :  { %405 = vmatprep.subr.bf16.mxu0 %v462_v12  ;;  %446 = vmatprep.mubr.msk.bf16.mxu1 %vm483_vm0, %v482_v1 }
  0x17   :  { %406 = vmatpush3.bf16.msra.mxu0 %v463_v13 }
  0x18   :  { %407 = vmatprep.subr.bf16.mxu0 %v464_v15 }
  0x1b   :  { %408 = vmatpush3.bf16.msra.mxu0 %v465_v18  ;;  %447 = vmatmul.mubr.msk.bf16.gmra.mxu1 %vm223_vm1, %v481_v24 }
  0x1c   :  { %409 = vmatprep.subr.bf16.mxu0 %v467_v19 }
  0x1f   :  { %410 = vmatpush3.bf16.msra.mxu0 %v468_v20 }
  0x22   :  { %266 = vmatmul.mubr.bf16.vlgmr.msra.gmra.mxu0 %v470_v22 }
  0x23   :  { %273 = vmatprep.mubr.bf16.mxu0 %v474_v23 }
  0x2a   :  { %274 = vmatmul.mubr.bf16.gmra.mxu0 %v476_v25 }
  0x2b   :  { %281 = vmatprep.mubr.bf16.mxu0 %v478_v26 }
  0x32   :  { %282 = vmatmul.mubr.bf16.gmra.mxu0 %v480_v27 }
  0xcb   :  { %v324_v28 = vpop.f32.mrf.mxu1 }
  0xcd   :  { %v440_v29 = vpop.f32.mrf.mxu1 }
  0xcf   :  { %v327_v30 = vpop.f32.mrf.mxu1 }
  0xd1   :  { %v441_v31 = vpop.f32.mrf.mxu1 }
  0xd3   :  { %v332_v32 = vpop.f32.mrf.mxu1 }
  0xd5   :  { %v444_v33 = vpop.f32.mrf.mxu1 }
  0xd7   :  { %v335_v35 = vpop.f32.mrf.mxu1 }
  0xd9   :  { %v445_v39 = vpop.f32.mrf.mxu1 }
  0xdb   :  { %v340_v42 = vpop.f32.mrf.mxu1 }
  0xdd   :  { %v448_v46 = vpop.f32.mrf.mxu1 }
  0xdf   :  { %v343_v50 = vpop.f32.mrf.mxu1 }
  0xe1   :  { %v449_v54 = vpop.f32.mrf.mxu1 }
  0xe2   :  { %v411_v34 = vpop.f32.mrf.mxu0 }
  0xe4   :  { %v412_v37 = vpop.f32.mrf.mxu0 }
  0xe5   :  { %v413_v38 = vadd.f32 %v412_v37, %v411_v34 }
  0xe6   :  { %v414_v40 = vpop.f32.mrf.mxu0 }
  0xe7   :  { %v268_v41 = vadd.f32 %v413_v38, %v364_v36 }
  0xe8   :  { %v415_v43 = vpop.f32.mrf.mxu0 }
  0xe9   :  { %v325_v44 = vadd.f32 %v324_v28, %v268_v41  ;;  %v416_v45 = vadd.f32 %v415_v43, %v414_v40 }
  0xea   :  { %v417_v47 = vpop.f32.mrf.mxu0 }
  0xeb   :  { %v347_v48 = vmax.f32 %v325_v44, 0.0  ;;  %v271_v49 = vadd.f32 %v416_v45, %v364_v36 }
  0xec   :  { %v418_v51 = vpop.f32.mrf.mxu0 }
  0xed   :  { %353 = vst.msk [vmem:[%s620_s3] sm:$0xff] %vm223_vm1, %v347_v48  ;;  %v328_v52 = vadd.f32 %v327_v30, %v271_v49  ;;  %v419_v53 = vadd.f32 %v418_v51, %v417_v47 }
  0xee   :  { %v420_v55 = vpop.f32.mrf.mxu0 }
  0xef   :  { %v348_v56 = vmax.f32 %v328_v52, 0.0  ;;  %v276_v57 = vadd.f32 %v419_v53, %v364_v36 }
  0xf0   :  { %v421_v58 = vpop.f32.mrf.mxu0 }
  0xf1   :  { %354 = vst.msk [vmem:[%s620_s3 + $0x8] sm:$0xff] %vm223_vm1, %v348_v56  ;;  %v333_v59 = vadd.f32 %v332_v32, %v276_v57  ;;  %v422_v60 = vadd.f32 %v421_v58, %v420_v55 }
  0xf2   :  { %v423_v61 = vpop.f32.mrf.mxu0 }
  0xf3   :  { %v349_v62 = vmax.f32 %v333_v59, 0.0  ;;  %v279_v63 = vadd.f32 %v422_v60, %v364_v36 }
  0xf4   :  { %v424_v0 = vpop.f32.mrf.mxu0 }
  0xf5   :  { %355 = vst.msk [vmem:[%s620_s3 + $0x10] sm:$0xff] %vm223_vm1, %v349_v62  ;;  %v336_v1 = vadd.f32 %v335_v35, %v279_v63  ;;  %v425_v2 = vadd.f32 %v424_v0, %v423_v61 }
  0xf6   :  { %v426_v3 = vpop.f32.mrf.mxu0 }
  0xf7   :  { %v350_v4 = vmax.f32 %v336_v1, 0.0  ;;  %v284_v5 = vadd.f32 %v425_v2, %v364_v36 }
  0xf8   :  { %v427_v6 = vpop.f32.mrf.mxu0 }
  0xf9   :  { %356 = vst.msk [vmem:[%s620_s3 + $0x18] sm:$0xff] %vm223_vm1, %v350_v4  ;;  %v341_v7 = vadd.f32 %v340_v42, %v284_v5  ;;  %v428_v8 = vadd.f32 %v427_v6, %v426_v3 }
  0xfb   :  { %v351_v9 = vmax.f32 %v341_v7, 0.0  ;;  %v287_v10 = vadd.f32 %v428_v8, %v364_v36 }
  0xfd   :  { %357 = vst.msk [vmem:[%s620_s3 + $0x20] sm:$0xff] %vm223_vm1, %v351_v9  ;;  %v344_v11 = vadd.f32 %v343_v50, %v287_v10 }
  0xff   :  { %v352_v12 = vmax.f32 %v344_v11, 0.0 }
 0x101   :  { %359 = vst.msk [vmem:[%s620_s3 + $0x28] sm:$0x3] %vm358_vm2, %v352_v12 }

// kernel: encoder_forward.7
= control target key start
LH: loop header
LB: loop body
LE: loop exit
PB: predicated region body
PF: predicated region fallthrough
CT: control target
= control target key end

     0   :  { %s2752_s21 = smov 0   ;;  %s2754_s22 = smov 0   ;;  %s3134_s0 = inlined_call_operand.vmem [shape: f32[2,7,32], index: 0, kind: input, shape index: {}]   ;;  %s3135_s1 = inlined_call_operand.vmem [shape: f32[2,1,7], index: 1, kind: input, shape index: {}]   ;;  %s3136_s2 = inlined_call_operand.vmem [shape: f32[2,1,32], index: 2, kind: input, shape index: {}]   ;;  %s3137_s3 = inlined_call_operand.vmem [shape: f32[2,1,32], index: 3, kind: input, shape index: {}]   ;;  %s3138_s4 = inlined_call_operand.vmem [shape: bf16[2,32,96], index: 4, kind: input, shape index: {}]   ;;  %s3139_s5 = inlined_call_operand.vmem [shape: f32[2,1,96], index: 5, kind: input, shape index: {}]   ;;  %s3140_s6 = inlined_call_operand.vmem [shape: bf16[2,32,32], index: 6, kind: input, shape index: {}]   ;;  %s3141_s7 = inlined_call_operand.vmem [shape: f32[2,1,32], index: 7, kind: input, shape index: {}]   ;;  %s3142_s8 = inlined_call_operand.vmem [shape: f32[2,1,32], index: 8, kind: input, shape index: {}]   ;;  %s3143_s9 = inlined_call_operand.vmem [shape: f32[2,1,32], index: 9, kind: input, shape index: {}]   ;;  %s3144_s10 = inlined_call_operand.vmem [shape: bf16[2,32,64], index: 10, kind: input, shape index: {}]   ;;  %s3145_s11 = inlined_call_operand.vmem [shape: f32[2,1,64], index: 11, kind: input, shape index: {}]   ;;  %s3146_s12 = inlined_call_operand.vmem [shape: bf16[2,64,32], index: 12, kind: input, shape index: {}]   ;;  %s3147_s13 = inlined_call_operand.vmem [shape: f32[2,1,32], index: 13, kind: input, shape index: {}]   ;;  %s3148_s14 = inlined_call_operand.vmem [shape: f32[1,32], index: 14, kind: input, shape index: {}]   ;;  %s3149_s15 = inlined_call_operand.vmem [shape: f32[1,32], index: 15, kind: input, shape index: {}]   ;;  %s3150_s16 = inlined_call_operand.vmem [shape: f32[2,7,32], index: 16, kind: output, shape index: {}]  }
   0x1   :  { %3155 = sst [smem:[#allocation8_spill]] %s3134_s0  ;;  %s2756_s23 = smov 0  }
   0x2   :  { %3156 = sst [smem:[#allocation9_spill]] %s3135_s1  ;;  %s2758_s24 = smov 0  }
   0x3   :  { %3157 = sst [smem:[#allocation10_spill]] %s3138_s4  ;;  %s2760_s25 = smov 0  }
   0x4   :  { %3158 = sst [smem:[#allocation11_spill]] %s3140_s6 }
   0x5   :  { %3159 = sst [smem:[#allocation12_spill]] %s3141_s7 }
   0x6   :  { %3160 = sst [smem:[#allocation13_spill]] %s3142_s8 }
   0x7   :  { %3161 = sst [smem:[#allocation14_spill]] %s3146_s12 }
   0x8   :  { %3162 = sst [smem:[#allocation15_spill]] %s3147_s13 }
   0x9   :  { %3163 = sst [smem:[#allocation16_spill]] %s3148_s14 }
   0xa   :  { %3164 = sst [smem:[#allocation17_spill]] %s3149_s15 }
   0xb   :  { %3165 = sst [smem:[#allocation18_spill]] %s3150_s16 }
   0xc LB: > { %3166 = sst [smem:[#allocation2_spill]] %s2636_s21  ;;  %s35_s26 = sadd.s32 1, %s2644_s23  ;;  %s2652_s25 = sphi %s2760_s25, %s26_s25   ;;  %s2648_s24 = sphi %s2758_s24, %s3201_s24   ;;  %s2644_s23 = sphi %s2756_s23, %s3200_s23   ;;  %s2640_s22 = sphi %s2754_s22, %s3199_s22   ;;  %s2636_s21 = sphi %s2752_s21, %s3198_s21  }
   0xd   : > { %3167 = sst [smem:[#allocation3_spill]] %s2644_s23  ;;  %s38_s27 = sadd.s32 1, %s2648_s24 }
   0xe   : > { %3168 = sst [smem:[#allocation4_spill]] %s2648_s24  ;;  %p36_p0 = scmp.ge.s32.totalorder %s35_s26, 2 }
   0xf   : > { %3169 = sst [smem:[#allocation5_spill]] %s2652_s25  ;;  %p2358_p1 = scmp.ge.s32.totalorder %s2652_s25, 1 }
  0x10   : > { %p585_p2 = scmp.lt.s32.totalorder %s2652_s25, 5  ;;  %s3203_s26 = smov (%p36_p0, %s35_s26), 0 }
  0x11   : > { %3170 = sst [smem:[#allocation6_spill]] %s3203_s26  ;;  %s3205_s27 = smov (!%p36_p0, %s38_s27), %s2648_s24 }
  0x12   : > { %p586_p3 = pnand %p2358_p1, %p585_p2  ;;  %p40_p4 = scmp.ge.s32.totalorder %s3205_s27, 2 }
  0x13   : > { %p680_p5 = scmp.lt.s32.totalorder (!%p586_p3), %s2640_s22, 1  ;;  %p687_p6 = scmp.lt.s32.totalorder (!%p586_p3), %s2636_s21, 1 }
  0x14   : > { %s3207_s27 = smov (%p40_p4, %s3205_s27), 0  ;;  %589 = sbr.rel (%p586_p3) target bundleno = 2953 (0xb89), region = 84 }
  0x15   : > { %3171 = sst [smem:[#allocation7_spill]] %s3207_s27 }
  0x16   : > { %s3173_s20 = sld [smem:[#allocation8_spill]] (!%p586_p3) }
  0x17   : > { %s3174_s4 = sld [smem:[#allocation10_spill]] (!%p586_p3) }
  0x18   : > { %s3175_s6 = sld [smem:[#allocation11_spill]] (!%p586_p3) }
  0x19   : > { %s3209_s22 = smov (!%p680_p5, %s2640_s22), 1  ;;  %s3178_s15 = sld [smem:[#allocation15_spill]] }
  0x1a   : > { %s2788_s28 = scalar_select %p687_p6, %s2636_s21, 1 }
  0x1b   : > { %s2359_s29 = sshll.u32 %s3209_s22, 3  ;;  %s3179_s23 = sld [smem:[#allocation14_spill]] }
  0x1c   : > { %s683_s27 = scalar_lea.vmem %s3173_s20, %s2359_s29  ;;  %s2411_s21 = sshll.u32 %s2788_s28, 4 }
  0x1d   : > { %s2810_s13 = scalar_lea.vmem %s3174_s4, %s2411_s21  ;;  %s2836_s0 = scalar_lea.vmem %s3144_s10, %s2411_s21 }
  0x1e   : > { %s2819_s20 = scalar_lea.vmem %s3175_s6, %s2411_s21  ;;  %s722_s17 = scalar_lea.vmem %s3145_s11, %s2788_s28 }
  0x1f   : > { %s2414_s6 = sshll.u32 %s2788_s28, 5  ;;  %s730_s7 = scalar_lea.vmem %s3178_s15, %s2788_s28 }
  0x20   : > { %s3180_s4 = sld [smem:[#allocation18_spill]] }
  0x21   : > { %s2850_s8 = scalar_lea.vmem %s3179_s23, %s2414_s6  ;;  %s3181_s21 = sld [smem:[#allocation2_spill]] }
  0x26   : > { %s2855_s1 = scalar_lea.vmem %s3180_s4, %s2359_s29 }
  0x27   : > { %p2369_p7 = scmp.ne.s32.totalorder %s3181_s21, 0 }
  0x29   : > { %739 = sbr.rel (%p2369_p7) target bundleno = 48 (0x30), region = 88 }
  0x2e   : > { %v740_v0 = vld [vmem:[%s683_s27] sm:$0x7f]  ;;  %vm741_vm0 = vcmask 260096  }
  0x2f   : > { %742 = vst.msk [vmem:[%s2855_s1] sm:$0x7f] %vm741_vm0, %v740_v0 }
  0x30 PF: > { %vm747_vm1 = vcmask 260096   ;;  %v2582_v8 = vld [vmem:[%s2810_s13 + $0x8] sm:$0xff]   ;;  %v2654_v9 = vmov 0.0   ;;  %vm2655_vm2 = vmmov 0   ;;  %v2583_v10 = vld [vmem:[%s2810_s13] sm:$0xff]   ;;  %s3182_s13 = scalar_lea.vmem %s3136_s2, %s2788_s28  ;;  %s3183_s29 = scalar_lea.vmem %s3137_s3, %s2788_s28  ;;  %vm800_vm3 = vcmask 261120  }
  0x31   : > { %2445 = vmatprep.subr.bf16.mxu0 %v2654_v9  ;;  %2449 = vmatprep.mubr.msk.bf16.mxu0 %vm2655_vm2, %v2654_v9  ;;  %v2370_v15 = vld [vmem:[%s3182_s13] ss:$0 sm:$0xff]  ;;  %s3184_s18 = scalar_lea.vmem %s3139_s5, %s2788_s28  ;;  %s2656_s19 = smov 104   ;;  %v2660_v30 = vmov 1983009808   ;;  %v859_v32 = vlaneseq  ;;  %vm1298_vm4 = vcmask 64512  }
  0x32   : > { %2446 = vmatpush3.bf16.msra.mxu0 %v2582_v8  ;;  %2453 = vmatprep.subr.bf16.mxu1 %v2654_v9  ;;  %v2371_v17 = vld [vmem:[%s3183_s29] ss:$0 sm:$0xff]  ;;  %s2657_s24 = smov 120   ;;  %s2658_s26 = smov 112   ;;  %v857_v31 = vunpack.c.l.s4 %v2660_v30  ;;  %v2661_v36 = vmov 1934713408  }
  0x33   : > { %2447 = vmatprep.subr.bf16.mxu0 %v2654_v9  ;;  %2455 = vmatprep.mubr.msk.bf16.mxu1 %vm2655_vm2, %v2654_v9  ;;  %v2372_v21 = vld [vmem:[%s3184_s18] ss:$0 sm:$0xff]  ;;  %s2659_s14 = smov 96   ;;  %v860_v34 = vshrl.u32 %v859_v32, 7  ;;  %v889_v37 = vunpack.c.l.s4 %v2661_v36  ;;  %s3185_s16 = sld [smem:[#allocation9_spill]]  ;;  %vm1483_vm5 = vcmask 55296  }
  0x34   : > { %v858_v33 = vunpack.c.0.s8 %v857_v31  ;;  %vm1536_vm6 = vcmask 1042432   ;;  %vm1537_vm7 = vcmask 1043456   ;;  %vm1532_vm8 = vcmask 56320   ;;  %s2665_s4 = smov 8   ;;  %s2666_s6 = smov 24  }
  0x35   : > { %v890_v44 = vunpack.c.0.s8 %v889_v37  ;;  %vm1868_vm9 = vcmask 130048   ;;  %vm1870_vm10 = vcmask 195584   ;;  %s3187_s27 = sld [smem:[#allocation12_spill]]  ;;  %vm2077_vm11 = vcmask 523264  }
  0x36   : > { %v2860_v1 = vld [vmem:[%s2855_s1] sm:$0x7f]  ;;  %2448 = vmatpush3.bf16.msra.mxu0 %v2583_v10  ;;  %v2913_v40 = vsub.s32 %v858_v33, %v860_v34  ;;  %s3189_s30 = sld [smem:[#allocation13_spill]] }
  0x37   : > { %v748_v2 = vsel %vm747_vm1, %v2860_v1, 0.0  ;;  %2459 = vmatprep.subr.bf16.mxu0 %v2654_v9  ;;  %v2923_v50 = vsub.s32 %v890_v44, %v860_v34 }
  0x38   : > { %749 = vadd.xlane.f32.xlu0 %v748_v2 }
  0x39   : > { %s3186_s21 = scalar_lea.vmem %s3185_s16, %s3209_s22  ;;  %s2662_s22 = smov 64  }
  0x3b   : > { %s3188_s29 = scalar_lea.vmem %s3187_s27, %s2788_s28 }
  0x3c   : > { %s3190_s18 = scalar_lea.vmem %s3189_s30, %s2788_s28 }
  0xc1   : > { %v750_v3 = vpop.xlane.xlu0 %749 }
  0xc2   : > { %v752_v4 = vmul.f32 0.03125, %v750_v3 }
  0xc4   : > { %v753_v5 = vsub.f32 %v2860_v1, %v752_v4 }
  0xc6   : > { %v754_v6 = vmul.f32 %v753_v5, %v753_v5 }
  0xc8   : > { %v755_v7 = vsel %vm747_vm1, %v754_v6, 0.0 }
  0xc9   : > { %756 = vadd.xlane.f32.xlu0 %v755_v7 }
 0x152   : > { %v757_v11 = vpop.xlane.xlu0 %756 }
 0x153   : > { %v758_v12 = vmul.f32 0.03125, %v757_v11 }
 0x155   : > { %v759_v13 = vadd.f32 1e-12, %v758_v12 }
 0x157   : > { %2592 = vrsqrt.f32 %v759_v13 }
 0x164   : > { %v2593_v14 = vpop.eup %2592 }
 0x165   : > { %v761_v16 = vmul.f32 %v2593_v14, %v753_v5 }
 0x167   : > { %v768_v18 = vmul.f32 %v2370_v15, %v761_v16 }
 0x169   : > { %v775_v19 = vadd.f32 %v2371_v17, %v768_v18 }
 0x16b   : > { %v776_v20 = vpack.c.bf16 %v775_v19, %v775_v19 }
 0x16d   : > { %2450 = vmatmul.mubr.msk.bf16.vlgmr.msra.gmra.mxu0 %vm800_vm3, %v776_v20 }
 0x16e   : > { %2461 = vmatprep.mubr.msk.bf16.mxu0 %vm2655_vm2, %v2654_v9 }
 0x22d   : > { %v838_v22 = vpop.f32.mrf.mxu0 }
 0x22e   : > { %v2894_v23 = vadd.f32 %v2372_v21, %v838_v22 }
 0x22f   : > { %v2451_v24 = vpop.f32.mrf.mxu0 }
 0x230   : > { %851 = vrot.lane.b32.xlu0 %v2894_v23, %s2656_s19  ;;  %845 = vrot.lane.b32.xlu1 %v2894_v23, %s2657_s24 }
 0x231   : > { %v841_v25 = vpop.f32.mrf.mxu0 }
 0x233   : > { %v2452_v26 = vpop.f32.mrf.mxu0 }
 0x234   : > { %848 = vrot.lane.b32.xlu1 %v2894_v23, %s2658_s26  ;;  %s3191_s26 = scalar_lea.vmem %s3143_s9, %s2788_s28 }
 0x238   : > { %992 = vrot.lane.b32.xlu1 %v2894_v23, %s2659_s14 }
 0x2a2   : > { %v2900_v27 = vpop.permute.xlu1 %845  ;;  %v2906_v29 = vpop.permute.xlu0 %851 }
 0x2a3   : > { %994 = vrot.lane.b32.xlu1 %v2900_v27, %s2659_s14  ;;  %v870_v41 = vcombine.low %v2900_v27, %v2906_v29  ;;  %v871_v42 = vcombine.high %v2900_v27, %v2906_v29 }
 0x2a5   : > { %v878_v47 = vrot.slane %v870_v41, %v2913_v40  ;;  %v885_v48 = vrot.slane %v871_v42, %v2913_v40 }
 0x2a6   : > { %v2903_v28 = vpop.permute.xlu1 %848 }
 0x2a7   : > { %996 = vrot.lane.b32.xlu1 %v2903_v28, %s2659_s14  ;;  %v854_v38 = vcombine.low %v2894_v23, %v2903_v28  ;;  %v855_v39 = vcombine.high %v2894_v23, %v2903_v28 }
 0x2a9   : > { %v862_v45 = vrot.slane %v854_v38, %v2913_v40  ;;  %v869_v46 = vrot.slane %v855_v39, %v2913_v40 }
 0x2aa   : > { %v993_v35 = vpop.permute.xlu1 %992 }
 0x2ab   : > { %998 = vrot.lane.b32.xlu1 %v2906_v29, %s2659_s14  ;;  %v886_v51 = vcombine.low %v862_v45, %v878_v47  ;;  %v887_v52 = vcombine.high %v862_v45, %v878_v47  ;;  %v902_v53 = vcombine.low %v869_v46, %v885_v48  ;;  %v903_v54 = vcombine.high %v869_v46, %v885_v48 }
 0x2ad   : > { %v894_v60 = vrot.slane %v886_v51, %v2923_v50  ;;  %v901_v61 = vrot.slane %v887_v52, %v2923_v50  ;;  %v910_v62 = vrot.slane %v902_v53, %v2923_v50  ;;  %v919_v63 = vrot.slane %v903_v54, %v2923_v50 }
 0x2af   : > { %v920_v10 = vcombine.low %v894_v60, %v901_v61  ;;  %v2376_v11 = vcombine.high %v894_v60, %v901_v61  ;;  %v936_v12 = vcombine.low %v910_v62, %v919_v63  ;;  %v944_v13 = vcombine.high %v910_v62, %v2654_v9 }
 0x2b1   : > { %v927_v22 = vrot.slane %v920_v10, %v2913_v40  ;;  %v935_v24 = vrot.slane %v2376_v11, %v2913_v40  ;;  %v943_v25 = vrot.slane %v936_v12, %v2913_v40  ;;  %v951_v26 = vrot.slane %v944_v13, %v2913_v40  ;;  %v2379_v10 = vld [vmem:[%s3186_s21] ss:$0 sm:$0xff] }
 0x2b3   : > { %v952_v41 = vcombine.low %v927_v22, %v935_v24  ;;  %v968_v42 = vcombine.low %v943_v25, %v951_v26 }
 0x2b5   : > { %v976_v51 = vrot.slane %v968_v42, %v2923_v50 }
 0x315   : > { %v995_v43 = vpop.permute.xlu1 %994 }
 0x319   : > { %v997_v49 = vpop.permute.xlu1 %996 }
 0x31a   : > { %v1004_v55 = vcombine.low %v993_v35, %v997_v49  ;;  %v1005_v56 = vcombine.high %v993_v35, %v997_v49  ;;  %v960_v49 = vrot.slane %v952_v41, %v2923_v50 }
 0x31c   : > { %v1012_v0 = vrot.slane %v1004_v55, %v2913_v40  ;;  %v1019_v2 = vrot.slane %v1005_v56, %v2913_v40  ;;  %v953_v56 = vcombine.high %v927_v22, %v935_v24 }
 0x31d   : > { %v999_v57 = vpop.permute.xlu1 %998 }
 0x31e   : > { %v1020_v58 = vcombine.low %v995_v43, %v999_v57  ;;  %v1021_v59 = vcombine.high %v995_v43, %v999_v57  ;;  %v969_v57 = vcombine.high %v943_v25, %v951_v26 }
 0x320   : > { %v1028_v3 = vrot.slane %v1020_v58, %v2913_v40  ;;  %v1035_v4 = vrot.slane %v1021_v59, %v2913_v40  ;;  %v984_v58 = vcombine.low %v960_v49, %v976_v51  ;;  %v985_v59 = vcombine.high %v960_v49, %v976_v51 }
 0x322   : > { %v1036_v5 = vcombine.low %v1012_v0, %v1028_v3  ;;  %v1037_v6 = vcombine.high %v1012_v0, %v1028_v3  ;;  %v1052_v7 = vcombine.low %v1019_v2, %v1035_v4  ;;  %v1053_v8 = vcombine.high %v1019_v2, %v1035_v4 }
 0x323   : > { %v988_v62 = vpack.c.bf16 %v984_v58, %v984_v58  ;;  %v989_v63 = vpack.c.bf16 %v985_v59, %v985_v59  ;;  %v967_v0 = vrot.slane %v953_v56, %v2923_v50  ;;  %v983_v2 = vrot.slane %v969_v57, %v2923_v50 }
 0x324   : > { %v1044_v14 = vrot.slane %v1036_v5, %v2923_v50  ;;  %v1051_v15 = vrot.slane %v1037_v6, %v2923_v50  ;;  %v1060_v16 = vrot.slane %v1052_v7, %v2923_v50  ;;  %v1069_v17 = vrot.slane %v1053_v8, %v2923_v50 }
 0x325   : > { %v986_v5 = vcombine.low %v967_v0, %v983_v2  ;;  %v987_v6 = vcombine.high %v967_v0, %v983_v2 }
 0x326   : > { %v1070_v18 = vcombine.low %v1044_v14, %v1051_v15  ;;  %v2377_v19 = vcombine.high %v1044_v14, %v1051_v15  ;;  %v1086_v20 = vcombine.low %v1060_v16, %v1069_v17  ;;  %v1094_v21 = vcombine.high %v1060_v16, %v2654_v9 }
 0x327   : > { %v990_v7 = vpack.c.bf16 %v986_v5, %v986_v5  ;;  %v991_v8 = vpack.c.bf16 %v987_v6, %v987_v6 }
 0x328   : > { %v1077_v30 = vrot.slane %v1070_v18, %v2913_v40  ;;  %v1085_v31 = vrot.slane %v2377_v19, %v2913_v40  ;;  %v1093_v32 = vrot.slane %v1086_v20, %v2913_v40  ;;  %v1101_v33 = vrot.slane %v1094_v21, %v2913_v40 }
 0x32a   : > { %v1102_v34 = vcombine.low %v1077_v30, %v1085_v31  ;;  %v1118_v35 = vcombine.low %v1093_v32, %v1101_v33  ;;  %v1103_v36 = vcombine.high %v1077_v30, %v1085_v31  ;;  %v1119_v37 = vcombine.high %v1093_v32, %v1101_v33 }
 0x32c   : > { %v1110_v38 = vrot.slane %v1102_v34, %v2923_v50  ;;  %v1126_v39 = vrot.slane %v1118_v35, %v2923_v50  ;;  %v1117_v45 = vrot.slane %v1103_v36, %v2923_v50  ;;  %v1133_v46 = vrot.slane %v1119_v37, %v2923_v50 }
 0x32e   : > { %v1134_v43 = vcombine.low %v1110_v38, %v1126_v39  ;;  %v1135_v44 = vcombine.high %v1110_v38, %v1126_v39  ;;  %v1136_v54 = vcombine.low %v1117_v45, %v1133_v46  ;;  %v1137_v55 = vcombine.high %v1117_v45, %v1133_v46 }
 0x330   : > { %v1138_v47 = vpack.c.bf16 %v1134_v43, %v1134_v43  ;;  %v1139_v48 = vpack.c.bf16 %v1135_v44, %v1135_v44  ;;  %v1140_v60 = vpack.c.bf16 %v1136_v54, %v1136_v54  ;;  %v1141_v61 = vpack.c.bf16 %v1137_v55, %v1137_v55 }
 0x332   : > { %v1303_v52 = vsel %vm1298_vm4, %v1138_v47, 0  ;;  %v1349_v53 = vsel %vm1298_vm4, %v1139_v48, 0  ;;  %v1395_v3 = vsel %vm1298_vm4, %v1140_v60, 0  ;;  %v1441_v4 = vsel %vm1298_vm4, %v1141_v61, 0 }
 0x333   : > { %2454 = vmatpush3.bf16.xpose.msra.mxu1 %v1303_v52  ;;  %2460 = vmatpush3.bf16.xpose.msra.mxu0 %v1349_v53 }
 0x334   : > { %2465 = vmatprep.subr.bf16.mxu1 %v2654_v9  ;;  %2471 = vmatprep.subr.bf16.mxu0 %v2654_v9 }
 0x33a   : > { %2456 = vmatmul.mubr.msk.bf16.vlgmr.msra.gmra.mxu1 %vm1298_vm4, %v988_v62  ;;  %2462 = vmatmul.mubr.msk.bf16.vlgmr.msra.gmra.mxu0 %vm1298_vm4, %v989_v63 }
 0x33b   : > { %2466 = vmatpush3.bf16.xpose.msra.mxu1 %v1395_v3  ;;  %2472 = vmatpush3.bf16.xpose.msra.mxu0 %v1441_v4 }
 0x33c   : > { %2467 = vmatprep.mubr.msk.bf16.mxu1 %vm2655_vm2, %v2654_v9  ;;  %2473 = vmatprep.mubr.msk.bf16.mxu0 %vm2655_vm2, %v2654_v9 }
 0x33d   : > { %2477 = vmatprep.subr.bf16.mxu1 %v2654_v9  ;;  %2483 = vmatprep.subr.bf16.mxu0 %v2654_v9 }
 0x342   : > { %2468 = vmatmul.mubr.msk.bf16.vlgmr.msra.gmra.mxu1 %vm1298_vm4, %v990_v7  ;;  %2474 = vmatmul.mubr.msk.bf16.vlgmr.msra.gmra.mxu0 %vm1298_vm4, %v991_v8 }
 0x343   : > { %2479 = vmatprep.mubr.msk.bf16.mxu1 %vm2655_vm2, %v2654_v9  ;;  %2485 = vmatprep.mubr.msk.bf16.mxu0 %vm2655_vm2, %v2654_v9 }
 0x3fa   : > { %v1339_v11 = vpop.f32.mrf.mxu1  ;;  %v1385_v12 = vpop.f32.mrf.mxu0 }
 0x3fb   : > { %v1340_v13 = vadd.f32 %v2379_v10, %v1339_v11  ;;  %v1386_v14 = vadd.f32 %v2379_v10, %v1385_v12 }
 0x3fc   : > { %v2457_v15 = vpop.f32.mrf.mxu1  ;;  %v2463_v16 = vpop.f32.mrf.mxu0 }
 0x3fd   : > { %v1484_v17 = vsel %vm1483_vm5, %v1340_v13, -inf  ;;  %v1487_v18 = vsel %vm1483_vm5, %v1386_v14, -inf }
 0x3fe   : > { %1485 = vmax.xlane.f32.xlu1 %v1484_v17  ;;  %v1342_v19 = vpop.f32.mrf.mxu1  ;;  %1488 = vmax.xlane.f32.xlu0 %v1487_v18  ;;  %v1388_v20 = vpop.f32.mrf.mxu0 }
 0x400   : > { %v2458_v21 = vpop.f32.mrf.mxu1  ;;  %v2464_v22 = vpop.f32.mrf.mxu0 }
 0x402   : > { %v1431_v24 = vpop.f32.mrf.mxu1  ;;  %v1477_v25 = vpop.f32.mrf.mxu0 }
 0x403   : > { %v1432_v26 = vadd.f32 %v2379_v10, %v1431_v24  ;;  %v1478_v30 = vadd.f32 %v2379_v10, %v1477_v25 }
 0x404   : > { %v2469_v31 = vpop.f32.mrf.mxu1  ;;  %v2475_v32 = vpop.f32.mrf.mxu0 }
 0x405   : > { %v1490_v33 = vsel %vm1483_vm5, %v1432_v26, -inf  ;;  %v1493_v34 = vsel %vm1483_vm5, %v1478_v30, -inf }
 0x406   : > { %1491 = vmax.xlane.f32.xlu1 %v1490_v33  ;;  %v1434_v35 = vpop.f32.mrf.mxu1  ;;  %1494 = vmax.xlane.f32.xlu0 %v1493_v34  ;;  %v1480_v36 = vpop.f32.mrf.mxu0  ;;  %v2663_v33 = vmov 65535  }
 0x407   : > { %v1538_v34 = vsel %vm1536_vm6, 4294967295, %v2663_v33 }
 0x408   : > { %v2470_v37 = vpop.f32.mrf.mxu1  ;;  %v2476_v38 = vpop.f32.mrf.mxu0 }
 0x417   : > { %1142 = vrot.lane.b32.xlu1 %v2894_v23, %s2662_s22 }
 0x487   : > { %v1486_v39 = vpop.xlane.xlu1 %1485  ;;  %v1489_v41 = vpop.xlane.xlu0 %1488 }
 0x488   : > { %v1496_v42 = vsub.f32 %v1340_v13, %v1486_v39  ;;  %v1497_v43 = vsub.f32 %v1386_v14, %v1489_v41 }
 0x48a   : > { %v1500_v44 = vmul.f32 1.442695, %v1496_v42  ;;  %v1502_v45 = vmul.f32 1.442695, %v1497_v43 }
 0x48c   : > { %2594 = vpow2.f32 %v1500_v44 }
 0x48d   : > { %2596 = vpow2.f32 %v1502_v45 }
 0x48f   : > { %v1492_v23 = vpop.xlane.xlu1 %1491  ;;  %v1495_v52 = vpop.xlane.xlu0 %1494 }
 0x490   : > { %v1498_v51 = vsub.f32 %v1432_v26, %v1492_v23  ;;  %v1499_v53 = vsub.f32 %v1478_v30, %v1495_v52 }
 0x492   : > { %v1504_v54 = vmul.f32 1.442695, %v1498_v51  ;;  %v1506_v55 = vmul.f32 1.442695, %v1499_v53 }
 0x494   : > { %2598 = vpow2.f32 %v1504_v54 }
 0x495   : > { %2600 = vpow2.f32 %v1506_v55 }
 0x499   : > { %v2985_v46 = vpop.eup %2594 }
 0x49a   : > { %v2987_v47 = vpop.eup %2596  ;;  %v1508_v48 = vsel %vm1483_vm5, %v2985_v46, 0.0 }
 0x49b   : > { %1509 = vadd.xlane.f32.xlu1 %v1508_v48  ;;  %v1511_v49 = vsel %vm1483_vm5, %v2987_v47, 0.0  ;;  %v1539_v48 = vsel %vm1537_vm7, %v1538_v34, 0 }
 0x49c   : > { %1512 = vadd.xlane.f32.xlu0 %v1511_v49 }
 0x4a1   : > { %v2996_v56 = vpop.eup %2598 }
 0x4a2   : > { %v2998_v57 = vpop.eup %2600  ;;  %v1514_v58 = vsel %vm1483_vm5, %v2996_v56, 0.0 }
 0x4ac   : > { %1146 = vrot.lane.b32.xlu1 %v2903_v28, %s2662_s22  ;;  %v1517_v28 = vsel %vm1483_vm5, %v2998_v57, 0.0 }
 0x4b0   : > { %1148 = vrot.lane.b32.xlu1 %v2906_v29, %s2662_s22 }
 0x4b2   : > { %1144 = vrot.lane.b32.xlu0 %v2900_v27, %s2662_s22  ;;  %v1143_v27 = vpop.permute.xlu1 %1142 }
 0x4d1   : > { %1515 = vadd.xlane.f32.xlu0 %v1514_v58 }
 0x4d4   : > { %1518 = vadd.xlane.f32.xlu1 %v1517_v28 }
 0x524   : > { %v1510_v29 = vpop.xlane.xlu1 %1509 }
 0x525   : > { %v1513_v59 = vpop.xlane.xlu0 %1512  ;;  %2602 = vrcp.f32 %v1510_v29 }
 0x526   : > { %2604 = vrcp.f32 %v1513_v59 }
 0x528   : > { %v1147_v60 = vpop.permute.xlu1 %1146 }
 0x529   : > { %v1154_v61 = vcombine.low %v1143_v27, %v1147_v60  ;;  %v1155_v62 = vcombine.high %v1143_v27, %v1147_v60  ;;  %v1145_v63 = vpop.permute.xlu0 %1144 }
 0x52b   : > { %v1162_v4 = vrot.slane %v1154_v61, %v2913_v40  ;;  %v1169_v5 = vrot.slane %v1155_v62, %v2913_v40 }
 0x52c   : > { %v1149_v0 = vpop.permute.xlu1 %1148 }
 0x52d   : > { %v1170_v2 = vcombine.low %v1145_v63, %v1149_v0  ;;  %v1171_v3 = vcombine.high %v1145_v63, %v1149_v0 }
 0x52f   : > { %v1178_v6 = vrot.slane %v1170_v2, %v2913_v40  ;;  %v1185_v7 = vrot.slane %v1171_v3, %v2913_v40  ;;  %v2584_v3 = vld [vmem:[%s2819_s20 + $0x8] sm:$0xff]  }
 0x531   : > { %v1186_v8 = vcombine.low %v1162_v4, %v1178_v6  ;;  %v1187_v10 = vcombine.high %v1162_v4, %v1178_v6  ;;  %v1202_v11 = vcombine.low %v1169_v5, %v1185_v7  ;;  %v1203_v12 = vcombine.high %v1169_v5, %v1185_v7 }
 0x532   : > { %v2603_v35 = vpop.eup %2602 }
 0x533   : > { %v1194_v13 = vrot.slane %v1186_v8, %v2923_v50  ;;  %v1201_v14 = vrot.slane %v1187_v10, %v2923_v50  ;;  %v1210_v15 = vrot.slane %v1202_v11, %v2923_v50  ;;  %v1219_v16 = vrot.slane %v1203_v12, %v2923_v50  ;;  %v2605_v41 = vpop.eup %2604 }
 0x534   : > { %v1524_v51 = vmul.f32 %v2603_v35, %v2985_v46  ;;  %v1525_v52 = vmul.f32 %v2605_v41, %v2987_v47  ;;  %v2585_v35 = vld [vmem:[%s2819_s20] sm:$0xff]   ;;  %s2664_s20 = smov 16  }
 0x535   : > { %v1220_v17 = vcombine.low %v1194_v13, %v1201_v14  ;;  %v2378_v18 = vcombine.high %v1194_v13, %v1201_v14  ;;  %v1236_v19 = vcombine.low %v1210_v15, %v1219_v16  ;;  %v1244_v20 = vcombine.high %v1210_v15, %v2654_v9 }
 0x536   : > { %v1528_v28 = vpack.c.bf16 %v1524_v51, %v1524_v51  ;;  %v1529_v27 = vpack.c.bf16 %v1525_v52, %v1525_v52 }
 0x537   : > { %v1227_v21 = vrot.slane %v1220_v17, %v2913_v40  ;;  %v1235_v22 = vrot.slane %v2378_v18, %v2913_v40  ;;  %v1243_v24 = vrot.slane %v1236_v19, %v2913_v40  ;;  %v1251_v25 = vrot.slane %v1244_v20, %v2913_v40 }
 0x539   : > { %v1252_v26 = vcombine.low %v1227_v21, %v1235_v22  ;;  %v1253_v30 = vcombine.high %v1227_v21, %v1235_v22  ;;  %v1268_v31 = vcombine.low %v1243_v24, %v1251_v25  ;;  %v1269_v32 = vcombine.high %v1243_v24, %v1251_v25 }
 0x53b   : > { %v1260_v36 = vrot.slane %v1252_v26, %v2923_v50  ;;  %v1276_v37 = vrot.slane %v1268_v31, %v2923_v50  ;;  %v1267_v38 = vrot.slane %v1253_v30, %v2923_v50  ;;  %v1283_v39 = vrot.slane %v1269_v32, %v2923_v50 }
 0x53d   : > { %v1284_v42 = vcombine.low %v1260_v36, %v1276_v37  ;;  %v1285_v43 = vcombine.high %v1260_v36, %v1276_v37  ;;  %v1286_v44 = vcombine.low %v1267_v38, %v1283_v39  ;;  %v1287_v45 = vcombine.high %v1267_v38, %v1283_v39 }
 0x53f   : > { %v1288_v49 = vpack.c.bf16 %v1284_v42, %v1284_v42  ;;  %v1289_v23 = vpack.c.bf16 %v1285_v43, %v1285_v43  ;;  %v1290_v55 = vpack.c.bf16 %v1286_v44, %v1286_v44  ;;  %v1291_v58 = vpack.c.bf16 %v1287_v45, %v1287_v45 }
 0x541   : > { %v1541_v53 = vand.u32 %v1539_v48, %v1288_v49  ;;  %v1587_v54 = vand.u32 %v1539_v48, %v1289_v23  ;;  %v1633_v29 = vand.u32 %v1539_v48, %v1290_v55  ;;  %v1679_v59 = vand.u32 %v1539_v48, %v1291_v58 }
 0x543   : > { %2478 = vmatpush3.bf16.msra.mxu1 %v1541_v53  ;;  %2484 = vmatpush3.bf16.msra.mxu0 %v1587_v54 }
 0x544   : > { %2489 = vmatprep.subr.bf16.mxu1 %v2654_v9  ;;  %2495 = vmatprep.subr.bf16.mxu0 %v2654_v9 }
 0x546   : > { %2480 = vmatmul.mubr.msk.bf16.vlgmr.msra.gmra.mxu1 %vm1532_vm8, %v1528_v28  ;;  %2486 = vmatmul.mubr.msk.bf16.vlgmr.msra.gmra.mxu0 %vm1532_vm8, %v1529_v27 }
 0x547   : > { %2490 = vmatpush3.bf16.msra.mxu1 %v1633_v29  ;;  %2496 = vmatpush3.bf16.msra.mxu0 %v1679_v59 }
 0x548   : > { %2491 = vmatprep.mubr.msk.bf16.mxu1 %vm2655_vm2, %v2654_v9  ;;  %2497 = vmatprep.mubr.msk.bf16.mxu0 %vm2655_vm2, %v2654_v9 }
 0x549   : > { %2501 = vmatprep.subr.bf16.mxu1 %v2654_v9  ;;  %2509 = vmatprep.subr.bf16.mxu0 %v2654_v9 }
 0x55a   : > { %v1516_v46 = vpop.xlane.xlu0 %1515 }
 0x55b   : > { %2606 = vrcp.f32 %v1516_v46 }
 0x55d   : > { %v1519_v47 = vpop.xlane.xlu1 %1518 }
 0x55e   : > { %2608 = vrcp.f32 %v1519_v47 }
 0x568   : > { %v2607_v60 = vpop.eup %2606 }
 0x569   : > { %v1526_v61 = vmul.f32 %v2607_v60, %v2996_v56 }
 0x56b   : > { %v2609_v62 = vpop.eup %2608  ;;  %v1530_v63 = vpack.c.bf16 %v1526_v61, %v1526_v61 }
 0x56c   : > { %v1527_v0 = vmul.f32 %v2609_v62, %v2998_v57 }
 0x56d   : > { %2492 = vmatmul.mubr.msk.bf16.vlgmr.msra.gmra.mxu1 %vm1532_vm8, %v1530_v63 }
 0x56e   : > { %v1531_v2 = vpack.c.bf16 %v1527_v0, %v1527_v0  ;;  %2505 = vmatprep.mubr.msk.bf16.mxu1 %vm2655_vm2, %v2654_v9  ;;  %2502 = vmatpush3.bf16.msra.mxu1 %v2584_v3 }
 0x56f   : > { %2503 = vmatprep.subr.bf16.mxu1 %v2654_v9 }
 0x570   : > { %2498 = vmatmul.mubr.msk.bf16.vlgmr.msra.gmra.mxu0 %vm1532_vm8, %v1531_v2  ;;  %v2389_v2 = vld [vmem:[%s3188_s29] ss:$0 sm:$0xff] }
 0x571   : > { %2513 = vmatprep.mubr.msk.bf16.mxu0 %vm2655_vm2, %v2654_v9 }
 0x572   : > { %2504 = vmatpush3.bf16.msra.mxu1 %v2585_v35 }
 0x573   : > { %2517 = vmatprep.subr.bf16.mxu1 %v2654_v9 }
 0x606   : > { %v1577_v56 = vpop.f32.mrf.mxu1  ;;  %v1623_v4 = vpop.f32.mrf.mxu0 }
 0x608   : > { %v2481_v5 = vpop.f32.mrf.mxu1  ;;  %v2487_v6 = vpop.f32.mrf.mxu0 }
 0x60a   : > { %v1580_v57 = vpop.f32.mrf.mxu1  ;;  %v1626_v7 = vpop.f32.mrf.mxu0 }
 0x60c   : > { %v2482_v8 = vpop.f32.mrf.mxu1  ;;  %v2488_v10 = vpop.f32.mrf.mxu0 }
 0x62d   : > { %v1669_v11 = vpop.f32.mrf.mxu1 }
 0x62e   : > { %v1721_v12 = vcombine.low %v1577_v56, %v1669_v11  ;;  %v1722_v13 = vcombine.high %v1577_v56, %v1669_v11 }
 0x62f   : > { %v2493_v14 = vpop.f32.mrf.mxu1 }
 0x630   : > { %v1715_v15 = vpop.f32.mrf.mxu0  ;;  %v1729_v20 = vrot.slane %v1721_v12, %v2913_v40  ;;  %v1736_v21 = vrot.slane %v1722_v13, %v2913_v40  ;;  %v2586_v14 = vld [vmem:[%s2836_s0 + $0x8] sm:$0xff]  }
 0x631   : > { %v1672_v16 = vpop.f32.mrf.mxu1  ;;  %v1737_v17 = vcombine.low %v1623_v4, %v1715_v15  ;;  %v1738_v18 = vcombine.high %v1623_v4, %v1715_v15  ;;  %2510 = vmatpush3.bf16.msra.mxu0 %v2586_v14  ;;  %v2587_v15 = vld [vmem:[%s2836_s0] sm:$0xff]  }
 0x632   : > { %v2499_v19 = vpop.f32.mrf.mxu0  ;;  %2511 = vmatprep.subr.bf16.mxu0 %v2654_v9  ;;  %v2589_v16 = vld [vmem:[%s2850_s8 + $0x10] sm:$0xff]  }
 0x633   : > { %v1745_v22 = vrot.slane %v1737_v17, %v2913_v40  ;;  %v1752_v24 = vrot.slane %v1738_v18, %v2913_v40  ;;  %v2494_v25 = vpop.f32.mrf.mxu1 }
 0x634   : > { %v1718_v26 = vpop.f32.mrf.mxu0 }
 0x635   : > { %v1753_v30 = vcombine.low %v1729_v20, %v1745_v22  ;;  %v1754_v31 = vcombine.high %v1729_v20, %v1745_v22  ;;  %v1769_v32 = vcombine.low %v1736_v21, %v1752_v24  ;;  %v1770_v33 = vcombine.high %v1736_v21, %v1752_v24  ;;  %2512 = vmatpush3.bf16.msra.mxu0 %v2587_v15  ;;  %v2393_v21 = vld [vmem:[%s3190_s18] ss:$0 sm:$0xff] }
 0x636   : > { %v2500_v34 = vpop.f32.mrf.mxu0  ;;  %v2394_v24 = vld [vmem:[%s3191_s26] ss:$0 sm:$0xff] }
 0x637   : > { %v1761_v36 = vrot.slane %v1753_v30, %v2923_v50  ;;  %v1768_v37 = vrot.slane %v1754_v31, %v2923_v50  ;;  %v1777_v38 = vrot.slane %v1769_v32, %v2923_v50  ;;  %v1786_v39 = vrot.slane %v1770_v33, %v2923_v50  ;;  %v2590_v31 = vld [vmem:[%s2850_s8 + $0x8] sm:$0xff]   ;;  %v2591_v32 = vld [vmem:[%s2850_s8] sm:$0xff]  }
 0x638   : > { %v2395_v33 = vld [vmem:[%s722_s17] ss:$0 sm:$0xff] }
 0x639   : > { %v1787_v41 = vcombine.low %v1761_v36, %v1768_v37  ;;  %v2388_v42 = vcombine.high %v1761_v36, %v1768_v37  ;;  %v1803_v43 = vcombine.low %v1777_v38, %v1786_v39  ;;  %v1811_v44 = vcombine.high %v1777_v38, %v2654_v9 }
 0x63b   : > { %v1794_v45 = vrot.slane %v1787_v41, %v2913_v40  ;;  %v1802_v48 = vrot.slane %v2388_v42, %v2913_v40  ;;  %v1810_v49 = vrot.slane %v1803_v43, %v2913_v40  ;;  %v1818_v23 = vrot.slane %v1811_v44, %v2913_v40 }
 0x63d   : > { %v1820_v51 = vcombine.high %v1794_v45, %v1802_v48  ;;  %v1836_v52 = vcombine.high %v1810_v49, %v1818_v23  ;;  %v1819_v53 = vcombine.low %v1794_v45, %v1802_v48  ;;  %v1835_v54 = vcombine.low %v1810_v49, %v1818_v23 }
 0x63f   : > { %v1834_v55 = vrot.slane %v1820_v51, %v2923_v50  ;;  %v1850_v58 = vrot.slane %v1836_v52, %v2923_v50  ;;  %v1827_v28 = vrot.slane %v1819_v53, %v2923_v50  ;;  %v1843_v27 = vrot.slane %v1835_v54, %v2923_v50 }
 0x641   : > { %v1853_v29 = vcombine.low %v1834_v55, %v1850_v58  ;;  %v1852_v59 = vcombine.high %v1827_v28, %v1843_v27  ;;  %v1851_v46 = vcombine.low %v1827_v28, %v1843_v27  ;;  %v1854_v40 = vcombine.high %v1834_v55, %v1850_v58 }
 0x643   : > { %1860 = vrot.lane.b32.xlu1 %v1853_v29, %s2664_s20  ;;  %1856 = vrot.lane.b32.xlu0 %v1852_v59, %s2665_s4 }
 0x647   : > { %1864 = vrot.lane.b32.xlu0 %v1854_v40, %s2666_s6 }
 0x6b5   : > { %v1857_v47 = vpop.permute.xlu0 %1856  ;;  %v1861_v60 = vpop.permute.xlu1 %1860 }
 0x6b6   : > { %v1867_v61 = vsel %vm1298_vm4, %v1851_v46, %v1857_v47 }
 0x6b7   : > { %v1869_v63 = vsel %vm1868_vm9, %v1867_v61, %v1861_v60 }
 0x6b9   : > { %v1865_v62 = vpop.permute.xlu0 %1864 }
 0x6ba   : > { %v1871_v50 = vsel %vm1870_vm10, %v1869_v63, %v1865_v62 }
 0x6bb   : > { %v1872_v0 = vpack.c.bf16 %v1871_v50, %v1871_v50 }
 0x6bd   : > { %2506 = vmatmul.mubr.msk.bf16.vlgmr.msra.gmra.mxu1 %vm800_vm3, %v1872_v0 }
 0x6be   : > { %2525 = vmatprep.mubr.msk.bf16.mxu1 %vm2655_vm2, %v2654_v9 }
 0x77d   : > { %v1933_v3 = vpop.f32.mrf.mxu1 }
 0x77e   : > { %v1934_v56 = vadd.f32 %v2389_v2, %v1933_v3 }
 0x77f   : > { %v2507_v4 = vpop.f32.mrf.mxu1 }
 0x780   : > { %v1939_v5 = vadd.f32 %v1934_v56, %v2860_v1  ;;  %v2588_v1 = vld [vmem:[%s2850_s8 + $0x18] sm:$0xff]   ;;  %s3193_s8 = sld [smem:[#allocation2_spill]] }
 0x781   : > { %v1936_v6 = vpop.f32.mrf.mxu1  ;;  %2518 = vmatpush3.bf16.msra.mxu1 %v2588_v1 }
 0x782   : > { %v1942_v57 = vsel %vm747_vm1, %v1939_v5, 0.0  ;;  %2519 = vmatprep.subr.bf16.mxu1 %v2654_v9 }
 0x783   : > { %1943 = vadd.xlane.f32.xlu1 %v1942_v57  ;;  %v2508_v7 = vpop.f32.mrf.mxu1 }
 0x785   : > { %2520 = vmatpush3.bf16.msra.mxu1 %v2589_v16 }
 0x786   : > { %2521 = vmatprep.subr.bf16.mxu1 %v2654_v9  ;;  %p2405_p8 = scmp.ge.s32.totalorder %s3193_s8, 1 }
 0x789   : > { %2522 = vmatpush3.bf16.msra.mxu1 %v2590_v31 }
 0x78a   : > { %2523 = vmatprep.subr.bf16.mxu1 %v2654_v9  ;;  %v2399_v9 = vld [vmem:[%s730_s7] ss:$0 sm:$0xff] }
 0x78d   : > { %2524 = vmatpush3.bf16.msra.mxu1 %v2591_v32 }
 0x80c   : > { %v1944_v8 = vpop.xlane.xlu1 %1943 }
 0x80d   : > { %v1945_v10 = vmul.f32 0.03125, %v1944_v8 }
 0x80f   : > { %v1946_v11 = vsub.f32 %v1939_v5, %v1945_v10 }
 0x811   : > { %v1947_v12 = vmul.f32 %v1946_v11, %v1946_v11 }
 0x813   : > { %v1948_v13 = vsel %vm747_vm1, %v1947_v12, 0.0 }
 0x814   : > { %1949 = vadd.xlane.f32.xlu0 %v1948_v13 }
 0x89d   : > { %v1950_v17 = vpop.xlane.xlu0 %1949 }
 0x89e   : > { %v1951_v18 = vmul.f32 0.03125, %v1950_v17 }
 0x8a0   : > { %v1952_v19 = vadd.f32 1e-12, %v1951_v18 }
 0x8a2   : > { %2610 = vrsqrt.f32 %v1952_v19 }
 0x8af   : > { %v2611_v20 = vpop.eup %2610 }
 0x8b0   : > { %v1954_v22 = vmul.f32 %v2611_v20, %v1946_v11 }
 0x8b2   : > { %v1961_v25 = vmul.f32 %v2393_v21, %v1954_v22 }
 0x8b4   : > { %v1968_v26 = vadd.f32 %v2394_v24, %v1961_v25 }
 0x8b6   : > { %v1969_v30 = vpack.c.bf16 %v1968_v26, %v1968_v26 }
 0x8b8   : > { %2514 = vmatmul.mubr.msk.bf16.vlgmr.msra.gmra.mxu0 %vm800_vm3, %v1969_v30 }
 0x978   : > { %v2030_v34 = vpop.f32.mrf.mxu0 }
 0x979   : > { %v2031_v35 = vadd.f32 %v2395_v33, %v2030_v34 }
 0x97a   : > { %v2515_v36 = vpop.f32.mrf.mxu0 }
 0x97b   : > { %v2036_v37 = vmax.f32 %v2031_v35, 0.0 }
 0x97c   : > { %v2033_v38 = vpop.f32.mrf.mxu0 }
 0x97d   : > { %v2037_v39 = vpack.c.bf16 %v2036_v37, %v2036_v37 }
 0x97e   : > { %v2516_v41 = vpop.f32.mrf.mxu0 }
 0x97f   : > { %2526 = vmatmul.mubr.msk.bf16.vlgmr.msra.gmra.mxu1 %vm2077_vm11, %v2037_v39 }
 0xa3f   : > { %v2115_v42 = vpop.f32.mrf.mxu1 }
 0xa40   : > { %v2116_v43 = vadd.f32 %v2399_v9, %v2115_v42 }
 0xa41   : > { %v2527_v44 = vpop.f32.mrf.mxu1  ;;  %2125 = sbr.rel (%p2405_p8) target bundleno = 2631 (0xa47), region = 92 }
 0xa42   : > { %v2121_v45 = vadd.f32 %v2116_v43, %v1939_v5 }
 0xa43   : > { %v2118_v48 = vpop.f32.mrf.mxu1 }
 0xa45   : > { %v2528_v49 = vpop.f32.mrf.mxu1 }
 0xa46   : > { %2126 = vst.msk [vmem:[%s2855_s1] sm:$0x7f] %vm747_vm1, %v2121_v45 }
 0xa47 PF: > { %s3194_s17 = sld [smem:[#allocation2_spill]] }
 0xa4d   : > { %p2406_p9 = scmp.ne.s32.totalorder %s3194_s17, 1 }
 0xa4e   : > { %s3195_s22 = sld [smem:[#allocation16_spill]] (!%p2406_p9) }
 0xa4f   : > { %2130 = sbr.rel (%p2406_p9) target bundleno = 2953 (0xb89), region = 96  ;;  %s3196_s6 = sld [smem:[#allocation17_spill]] (!%p2406_p9) }
 0xa54   : > { %v2133_v23 = vsel %vm747_vm1, %v2121_v45, 0.0  ;;  %v2407_v59 = vld [vmem:[%s3195_s22] ss:$0 sm:$0xff] }
 0xa55   : > { %2134 = vadd.xlane.f32.xlu0 %v2133_v23  ;;  %v2408_v40 = vld [vmem:[%s3196_s6] ss:$0 sm:$0xff] }
 0xade   : > { %v2135_v51 = vpop.xlane.xlu0 %2134 }
 0xadf   : > { %v2136_v52 = vmul.f32 0.03125, %v2135_v51 }
 0xae1   : > { %v2137_v53 = vsub.f32 %v2121_v45, %v2136_v52 }
 0xae3   : > { %v2138_v54 = vmul.f32 %v2137_v53, %v2137_v53 }
 0xae5   : > { %v2139_v55 = vsel %vm747_vm1, %v2138_v54, 0.0 }
 0xae6   : > { %2140 = vadd.xlane.f32.xlu0 %v2139_v55 }
 0xb6f   : > { %v2141_v58 = vpop.xlane.xlu0 %2140 }
 0xb70   : > { %v2142_v28 = vmul.f32 0.03125, %v2141_v58 }
 0xb72   : > { %v2143_v27 = vadd.f32 1e-12, %v2142_v28 }
 0xb74   : > { %2612 = vrsqrt.f32 %v2143_v27 }
 0xb81   : > { %v2613_v29 = vpop.eup %2612 }
 0xb82   : > { %v2145_v46 = vmul.f32 %v2613_v29, %v2137_v53 }
 0xb84   : > { %v2152_v47 = vmul.f32 %v2407_v59, %v2145_v46 }
 0xb86   : > { %v2159_v60 = vadd.f32 %v2408_v40, %v2152_v47 }
 0xb88   : > { %2160 = vst.msk [vmem:[%s2855_s1] sm:$0x7f] %vm747_vm1, %v2159_v60 }
 0xb89 PF: > { %s3197_s13 = sld [smem:[#allocation5_spill]] }
 0xb8a   : > { %s3198_s21 = sld [smem:[#allocation3_spill]] }
 0xb8b   : > { %s3199_s22 = sld [smem:[#allocation4_spill]] }
 0xb8c   : > { %s3200_s23 = sld [smem:[#allocation6_spill]] }
 0xb8d   : > { %s3201_s24 = sld [smem:[#allocation7_spill]] }
 0xb8f   : > { %s26_s25 = sadd.s32 1, %s3197_s13  }
 0xb90   : > { %p23_p10 = scmp.ge.s32.totalorder %s26_s25, 6  }
 0xb92   :  { %25 = sbr.rel (!%p23_p10) target bundleno = 12 (0xc), region = 165 }

</bundles_post_ra>
